<compile_context>
chip_gen: v5e
topology: v5e:2x2
jax: 0.10.0
libtpu: 0.0.40
codegen_flags: <defaults>
</compile_context>

<pallas_src>
import functools

import jax
import jax.numpy as jnp
from jax import lax
from jax.experimental import pallas as pl
from jax.experimental.pallas import tpu as pltpu


# --------------------------------------------------------------------------
# Pallas kernels
# --------------------------------------------------------------------------

def _inproj_kernel(char_ref, gemb_ref, gmsk_ref, wc_ref, wg_ref, b_ref, out_ref):
    """Fused gaz masked-mean pooling + LSTM input projection (one direction,
    one row tile).

      pooled = sum_g gemb[r, g, :] * gmsk[r, g]     (mask pre-scaled by 1/count)
      out    = char @ w_char + pooled @ w_gaz + b   -> [TM, 4H]
    """
    gmsk = jnp.expand_dims(gmsk_ref[...], -1)                     # [TM, G, 1]
    pooled = jnp.sum(gemb_ref[...] * gmsk, axis=1)                # [TM, E]
    out_ref[...] = (
        jnp.dot(char_ref[...], wc_ref[...], preferred_element_type=jnp.float32)
        + jnp.dot(pooled, wg_ref[...], preferred_element_type=jnp.float32)
        + b_ref[...])


def _lstm_chunk_kernel(gin_ref, whh_ref, hout_ref, h_sc, c_sc,
                       *, hidden, t_chunk):
    """T_CHUNK timesteps of one LSTM direction.  Grid = (direction, chunk);
    the chunk axis is sequential ("arbitrary"), direction is "parallel".
    Input gates already contain x @ W_ih + b; only h @ W_hh is done here."""
    @pl.when(pl.program_id(1) == 0)
    def _():
        h_sc[...] = jnp.zeros_like(h_sc)
        c_sc[...] = jnp.zeros_like(c_sc)

    whh = whh_ref[...]                                            # [H, 4H]

    def step(t, carry):
        h, c = carry
        gates = gin_ref[t] + jnp.dot(h, whh,
                                     preferred_element_type=jnp.float32)
        # PyTorch nn.LSTM gate order: input, forget, cell(g), output.
        # Two wide EUP ops over all 4 gates, then lane slices.
        sg = jax.nn.sigmoid(gates)
        tg = jnp.tanh(gates)
        i = sg[:, 0 * hidden:1 * hidden]
        f = sg[:, 1 * hidden:2 * hidden]
        g = tg[:, 2 * hidden:3 * hidden]
        o = sg[:, 3 * hidden:4 * hidden]
        c_new = f * c + i * g
        h_new = o * jnp.tanh(c_new)
        hout_ref[t] = h_new
        return (h_new, c_new)

    h, c = lax.fori_loop(0, t_chunk, step, (h_sc[...], c_sc[...]), unroll=True)
    h_sc[...] = h
    c_sc[...] = c


def _tag_kernel(hf_ref, hb_ref, wt_ref, wb_ref, b_ref, o_ref):
    """hidden2tag fused with the fwd/bwd concat:
       out = h_fwd @ W_top + h_bwd @ W_bot + b  -> [TM, T_pad] (lane dense)."""
    o_ref[...] = (
        jnp.dot(hf_ref[...], wt_ref[...], preferred_element_type=jnp.float32)
        + jnp.dot(hb_ref[...], wb_ref[...], preferred_element_type=jnp.float32)
        + b_ref[...])


# --------------------------------------------------------------------------
# Pallas wrappers
# --------------------------------------------------------------------------

def _pad_rows(rows, row_tile):
    tm = rows if rows <= row_tile else row_tile
    rows_pad = -(-rows // tm) * tm
    return tm, rows_pad


def input_projection(char_both, gemb_both, gmsk_both, wc_both, wg_both, b_both,
                     *, row_tile=512):
    """char_both [2,R,Ec], gemb_both [2,R,G,E], gmsk_both [2,R,G] ->
    gates_in [2, R, 4H] (both directions)."""
    _, R, Ec = char_both.shape
    G, E = gemb_both.shape[2], gemb_both.shape[3]
    H4 = wc_both.shape[2]
    tm, R_pad = _pad_rows(R, row_tile)
    if R_pad != R:
        char_both = jnp.pad(char_both, ((0, 0), (0, R_pad - R), (0, 0)))
        gemb_both = jnp.pad(gemb_both, ((0, 0), (0, R_pad - R), (0, 0), (0, 0)))
        gmsk_both = jnp.pad(gmsk_both, ((0, 0), (0, R_pad - R), (0, 0)))

    out = pl.pallas_call(
        _inproj_kernel,
        grid_spec=pltpu.PrefetchScalarGridSpec(
            num_scalar_prefetch=0,
            grid=(2, R_pad // tm),
            in_specs=[
                pl.BlockSpec((None, tm, Ec), lambda d, i: (d, i, 0)),
                pl.BlockSpec((None, tm, G, E), lambda d, i: (d, i, 0, 0)),
                pl.BlockSpec((None, tm, G), lambda d, i: (d, i, 0)),
                pl.BlockSpec((None, Ec, H4), lambda d, i: (d, 0, 0)),
                pl.BlockSpec((None, E, H4), lambda d, i: (d, 0, 0)),
                pl.BlockSpec((None, 1, H4), lambda d, i: (d, 0, 0)),
            ],
            out_specs=pl.BlockSpec((None, tm, H4), lambda d, i: (d, i, 0)),
        ),
        out_shape=jax.ShapeDtypeStruct((2, R_pad, H4), jnp.float32),
        compiler_params=pltpu.CompilerParams(
            dimension_semantics=("parallel", "parallel")),
    )(char_both, gemb_both, gmsk_both, wc_both, wg_both, b_both)
    return out[:, :R]


def bilstm_recurrence(gates_both, whh_both, hidden, *, t_chunk=32):
    """gates_both [2,S,B,4H], whh_both [2,H,4H] -> h [2,S,B,H]."""
    _, S, B, H4 = gates_both.shape
    tc = min(t_chunk, S)
    S_pad = -(-S // tc) * tc
    if S_pad != S:
        gates_both = jnp.pad(gates_both,
                             ((0, 0), (0, S_pad - S), (0, 0), (0, 0)))

    kern = functools.partial(_lstm_chunk_kernel, hidden=hidden, t_chunk=tc)
    hout = pl.pallas_call(
        kern,
        grid_spec=pltpu.PrefetchScalarGridSpec(
            num_scalar_prefetch=0,
            grid=(2, S_pad // tc),
            in_specs=[
                pl.BlockSpec((None, tc, B, H4), lambda d, c: (d, c, 0, 0)),
                pl.BlockSpec((None, hidden, H4), lambda d, c: (d, 0, 0)),
            ],
            out_specs=pl.BlockSpec((None, tc, B, hidden),
                                   lambda d, c: (d, c, 0, 0)),
            scratch_shapes=[pltpu.VMEM((B, hidden), jnp.float32),
                            pltpu.VMEM((B, hidden), jnp.float32)],
        ),
        out_shape=jax.ShapeDtypeStruct((2, S_pad, B, hidden), jnp.float32),
        compiler_params=pltpu.CompilerParams(
            dimension_semantics=("parallel", "arbitrary")),
    )(gates_both, whh_both)
    return hout[:, :S]


def hidden2tag_fused(h_fwd, h_bwd, w_tag, b_tag, *, row_tile=512):
    """h_fwd / h_bwd: [B,S,H]; w_tag: [2H,T]; b_tag: [T] -> [B,S,T]."""
    B, S, H = h_fwd.shape
    T = w_tag.shape[1]
    T_pad = -(-T // 128) * 128
    w_top = jnp.pad(w_tag[:H], ((0, 0), (0, T_pad - T))).astype(jnp.float32)
    w_bot = jnp.pad(w_tag[H:], ((0, 0), (0, T_pad - T))).astype(jnp.float32)
    b_pad = jnp.pad(b_tag, (0, T_pad - T)).reshape(1, T_pad).astype(jnp.float32)

    R = B * S
    hf = h_fwd.reshape(R, H).astype(jnp.float32)
    hb = h_bwd.reshape(R, H).astype(jnp.float32)
    tm, R_pad = _pad_rows(R, row_tile)
    if R_pad != R:
        hf = jnp.pad(hf, ((0, R_pad - R), (0, 0)))
        hb = jnp.pad(hb, ((0, R_pad - R), (0, 0)))

    out = pl.pallas_call(
        _tag_kernel,
        grid_spec=pltpu.PrefetchScalarGridSpec(
            num_scalar_prefetch=0,
            grid=(R_pad // tm,),
            in_specs=[
                pl.BlockSpec((tm, H), lambda i: (i, 0)),
                pl.BlockSpec((tm, H), lambda i: (i, 0)),
                pl.BlockSpec((H, T_pad), lambda i: (0, 0)),
                pl.BlockSpec((H, T_pad), lambda i: (0, 0)),
                pl.BlockSpec((1, T_pad), lambda i: (0, 0)),
            ],
            out_specs=pl.BlockSpec((tm, T_pad), lambda i: (i, 0)),
        ),
        out_shape=jax.ShapeDtypeStruct((R_pad, T_pad), jnp.float32),
        compiler_params=pltpu.CompilerParams(
            dimension_semantics=("parallel",)),
    )(hf, hb, w_top, w_bot, b_pad)
    return out[:R, :T].reshape(B, S, T)


# --------------------------------------------------------------------------
# Plain-JAX glue (reversal of padded sequences, CRF viterbi decode)
# --------------------------------------------------------------------------

def reverse_padded_sequence(x, lengths):
    """Reverse the first lengths[b] entries of each sequence; keep padding."""
    B, S = x.shape[0], x.shape[1]
    pos = jnp.arange(S)[None, :]
    L = lengths[:, None]
    idx = jnp.where(pos < L, L - 1 - pos, pos)                      # [B, S]
    return x[jnp.arange(B)[:, None], idx]


def viterbi_decode(scores, mask, transitions):
    """Masked Viterbi decode.  scores: [B, S, T]; transitions[i, j] = i -> j.
    Tag indices T-2 / T-1 are START / STOP (hence label_size + 2)."""
    # TODO(synk): exact NCRF++ CRF index conventions approximated with a
    # standard masked viterbi (START/STOP as the last two tags).
    B, S, T = scores.shape
    START, STOP = T - 2, T - 1
    maskf = mask.astype(jnp.float32)

    vit0 = transitions[START][None, :] + scores[:, 0]               # [B, T]

    def step(vit, inp):
        score_t, m_t = inp                                          # [B,T],[B]
        cand = vit[:, :, None] + transitions[None, :, :]            # [B,T,T]
        best = jnp.max(cand, axis=1)
        bp = jnp.argmax(cand, axis=1)                               # [B, T]
        new_vit = best + score_t
        m = m_t[:, None]
        vit_out = jnp.where(m > 0, new_vit, vit)
        bp_out = jnp.where(m > 0, bp,
                           jnp.broadcast_to(jnp.arange(T)[None, :], (B, T)))
        return vit_out, bp_out

    xs = (jnp.transpose(scores[:, 1:], (1, 0, 2)),
          jnp.transpose(maskf[:, 1:], (1, 0)))
    vit_final, bps = lax.scan(step, vit0, xs)                       # bps:[S-1,B,T]

    final = vit_final + transitions[:, STOP][None, :]
    last_tag = jnp.argmax(final, axis=-1)                           # [B]

    def back_step(tag, bp_t):
        new_tag = jnp.take_along_axis(bp_t, tag[:, None], axis=1)[:, 0]
        return new_tag, new_tag

    _, prev_tags = lax.scan(back_step, last_tag, bps, reverse=True)  # [S-1, B]
    tags = jnp.concatenate([prev_tags, last_tag[None]], axis=0)      # [S, B]
    tags = jnp.transpose(tags, (1, 0)).astype(jnp.int32)             # [B, S]
    return jnp.where(mask > 0, tags, 0)


# --------------------------------------------------------------------------
# CW_NER forward
# --------------------------------------------------------------------------

def cw_ner_forward(params, gaz_ids_fwd, gaz_mask_fwd,
                   gaz_ids_bwd, gaz_mask_bwd,
                   char_inputs, lengths, mask, *, hidden):
    """Mirrors CW_NER.forward.  gaz_ids_fwd comes from reverse_gaz_list and
    gaz_ids_bwd from gaz_list (which the module then reverses), matching the
    PyTorch code."""
    B, S = char_inputs.shape
    G = gaz_ids_fwd.shape[2]
    Ec = params["char_emb"].shape[1]
    E = params["gaz_emb"].shape[1]

    # reverse the backward-stream gaz tensors (reverse_padded_sequence)
    rev_gaz_ids = reverse_padded_sequence(gaz_ids_bwd, lengths)
    rev_gaz_mask = reverse_padded_sequence(gaz_mask_bwd, lengths)

    # char embeddings (gather, glue)
    char_embs = jnp.take(params["char_emb"], char_inputs, axis=0)   # [B,S,Ec]
    rev_char_embs = reverse_padded_sequence(char_embs, lengths)

    # gaz word-embedding gathers (glue); masked-mean pooling is fused into
    # the input-projection Pallas kernel below.
    # TODO(synk): Gaz_Embed(type=1) exact pooling variant unknown; masked
    # mean-pool over the gaz axis is used here.
    gemb_f = jnp.take(params["gaz_emb"], gaz_ids_fwd.reshape(-1),
                      axis=0).reshape(B, S, G, E)
    gemb_b = jnp.take(params["gaz_emb"], rev_gaz_ids.reshape(-1),
                      axis=0).reshape(B, S, G, E)

    def scaled_mask(m):
        m = m.astype(jnp.float32)
        cnt = jnp.maximum(jnp.sum(m, axis=-1, keepdims=True), 1.0)
        return m / cnt                                              # [B,S,G]

    msk_f = scaled_mask(gaz_mask_fwd)
    msk_b = scaled_mask(rev_gaz_mask)

    # time-major flatten: [B,S,...] -> [S*B, ...]
    def tm2(x):
        x = jnp.swapaxes(x, 0, 1)
        return x.reshape((S * B,) + x.shape[2:])

    char_both = jnp.stack([tm2(char_embs), tm2(rev_char_embs)]).astype(jnp.float32)
    gemb_both = jnp.stack([tm2(gemb_f), tm2(gemb_b)]).astype(jnp.float32)
    gmsk_both = jnp.stack([tm2(msk_f), tm2(msk_b)]).astype(jnp.float32)

    # W_ih split into char / gaz halves (concat-then-matmul == sum of partials)
    wc_both = jnp.stack([params["wih_f"][:Ec], params["wih_b"][:Ec]])
    wg_both = jnp.stack([params["wih_f"][Ec:], params["wih_b"][Ec:]])
    b_both = jnp.stack([params["b_f"].reshape(1, -1),
                        params["b_b"].reshape(1, -1)])

    # hoisted input projection (one big matmul per direction, gaz pool fused)
    gates_in = input_projection(char_both, gemb_both, gmsk_both,
                                wc_both, wg_both, b_both)           # [2,S*B,4H]
    gates_in = gates_in.reshape(2, S, B, 4 * hidden)

    # chunked sequential recurrence (only h @ W_hh per step)
    # TODO(synk): recurrence runs over padded timesteps (no pack_padded);
    # padded positions are CRF-masked downstream.
    whh_both = jnp.stack([params["whh_f"], params["whh_b"]])
    hout = bilstm_recurrence(gates_in, whh_both, hidden)            # [2,S,B,H]

    h_fwd = jnp.swapaxes(hout[0], 0, 1)                             # [B,S,H]
    h_bwd = reverse_padded_sequence(jnp.swapaxes(hout[1], 0, 1), lengths)

    # hidden2tag fused with the fwd/bwd concat (Pallas kernel)
    outs = hidden2tag_fused(h_fwd, h_bwd, params["w_tag"], params["b_tag"])

    # CRF viterbi decode
    tag_seq = viterbi_decode(outs, mask, params["transitions"])
    return tag_seq


# --------------------------------------------------------------------------
# Deterministic parameter / input construction and driver
# --------------------------------------------------------------------------

def make_params(key, char_vocab, gaz_vocab, char_dim, gaz_dim, hidden, n_tags):
    ks = jax.random.split(key, 12)
    d_in = char_dim + gaz_dim
    scale = 0.1
    p = {
        "char_emb": scale * jax.random.normal(ks[0], (char_vocab, char_dim), jnp.float32),
        "gaz_emb":  scale * jax.random.normal(ks[1], (gaz_vocab, gaz_dim), jnp.float32),
        "wih_f": scale * jax.random.normal(ks[2], (d_in, 4 * hidden), jnp.float32),
        "whh_f": scale * jax.random.normal(ks[3], (hidden, 4 * hidden), jnp.float32),
        "b_f":   jnp.zeros((4 * hidden,), jnp.float32),
        "wih_b": scale * jax.random.normal(ks[4], (d_in, 4 * hidden), jnp.float32),
        "whh_b": scale * jax.random.normal(ks[5], (hidden, 4 * hidden), jnp.float32),
        "b_b":   jnp.zeros((4 * hidden,), jnp.float32),
        "w_tag": scale * jax.random.normal(ks[6], (2 * hidden, n_tags), jnp.float32),
        "b_tag": scale * jax.random.normal(ks[7], (n_tags,), jnp.float32),
    }
    trans = scale * jax.random.normal(ks[8], (n_tags, n_tags), jnp.float32)
    # disallow transitions into START and out of STOP
    trans = trans.at[:, n_tags - 2].set(-1e4)
    trans = trans.at[n_tags - 1, :].set(-1e4)
    p["transitions"] = trans
    return p


if __name__ == "__main__":
    # small synthetic shapes consistent with the module's forward
    B, S = 2, 8
    CHAR_VOCAB, GAZ_VOCAB = 50, 80
    CHAR_DIM, GAZ_DIM = 16, 16
    HIDDEN = 32
    LABEL_SIZE = 10
    N_TAGS = LABEL_SIZE + 2          # hidden2tag outputs label_size + 2
    G = 4                            # max gaz words per character

    key = jax.random.PRNGKey(0)
    k_par, k_char, k_g1, k_g2, k_m1, k_m2 = jax.random.split(key, 6)

    params = make_params(k_par, CHAR_VOCAB, GAZ_VOCAB,
                         CHAR_DIM, GAZ_DIM, HIDDEN, N_TAGS)

    char_inputs = jax.random.randint(k_char, (B, S), 1, CHAR_VOCAB, jnp.int32)
    lengths = jnp.array([S, 5], dtype=jnp.int32)
    mask = (jnp.arange(S)[None, :] < lengths[:, None]).astype(jnp.int32)

    gaz_ids_fwd = jax.random.randint(k_g1, (B, S, G), 1, GAZ_VOCAB, jnp.int32)
    gaz_ids_bwd = jax.random.randint(k_g2, (B, S, G), 1, GAZ_VOCAB, jnp.int32)
    gaz_mask_fwd = jax.random.bernoulli(k_m1, 0.7, (B, S, G)).astype(jnp.float32)
    gaz_mask_bwd = jax.random.bernoulli(k_m2, 0.7, (B, S, G)).astype(jnp.float32)

    fwd = jax.jit(functools.partial(cw_ner_forward, hidden=HIDDEN))
    tag_seq = fwd(params, gaz_ids_fwd, gaz_mask_fwd,
                  gaz_ids_bwd, gaz_mask_bwd,
                  char_inputs, lengths, mask)
    tag_seq = jax.block_until_ready(tag_seq)
    assert tag_seq.shape == (B, S)
    print("KERNEL_OK")
</pallas_src>

<mosaic_0001>
module attributes {stable_mosaic.version = 11 : i64} {
  func.func @_inproj_kernel(%arg0: i32, %arg1: i32, %arg2: memref<1x16x16xf32, #tpu.memory_space<vmem>>, %arg3: memref<1x16x4x16xf32, #tpu.memory_space<vmem>>, %arg4: memref<1x16x4xf32, #tpu.memory_space<vmem>>, %arg5: memref<1x16x128xf32, #tpu.memory_space<vmem>>, %arg6: memref<1x16x128xf32, #tpu.memory_space<vmem>>, %arg7: memref<1x1x128xf32, #tpu.memory_space<vmem>>, %arg8: memref<1x16x128xf32, #tpu.memory_space<vmem>>) attributes {dimension_semantics = [#tpu.dimension_semantics<parallel>, #tpu.dimension_semantics<parallel>], iteration_bounds = array<i64: 2, 1>, scalar_prefetch = 0 : i64, scratch_operands = 0 : i64, tpu.core_type = #tpu.core_type<tc>, window_params = [{transform_indices = @transform_0, window_bounds = array<i64: 1, 16, 16>}, {transform_indices = @transform_1, window_bounds = array<i64: 1, 16, 4, 16>}, {transform_indices = @transform_2, window_bounds = array<i64: 1, 16, 4>}, {transform_indices = @transform_3, window_bounds = array<i64: 1, 16, 128>}, {transform_indices = @transform_4, window_bounds = array<i64: 1, 16, 128>}, {transform_indices = @transform_5, window_bounds = array<i64: 1, 1, 128>}, {transform_indices = @transform_6, window_bounds = array<i64: 1, 16, 128>}]} {
    %c0 = arith.constant 0 : index
    %c0_0 = arith.constant 0 : index
    %c0_1 = arith.constant 0 : index
    %0 = vector.load %arg4[%c0, %c0_0, %c0_1] : memref<1x16x4xf32, #tpu.memory_space<vmem>>, vector<1x16x4xf32>
    %1 = vector.shape_cast %0 : vector<1x16x4xf32> to vector<16x4xf32>
    %2 = vector.shape_cast %1 : vector<16x4xf32> to vector<16x4x1xf32>
    %c0_2 = arith.constant 0 : index
    %c0_3 = arith.constant 0 : index
    %c0_4 = arith.constant 0 : index
    %c0_5 = arith.constant 0 : index
    %3 = vector.load %arg3[%c0_2, %c0_3, %c0_4, %c0_5] : memref<1x16x4x16xf32, #tpu.memory_space<vmem>>, vector<1x16x4x16xf32>
    %4 = vector.shape_cast %3 : vector<1x16x4x16xf32> to vector<16x4x16xf32>
    %5 = vector.broadcast %2 : vector<16x4x1xf32> to vector<16x4x16xf32>
    %6 = arith.mulf %4, %5 : vector<16x4x16xf32>
    %cst = arith.constant dense<0.000000e+00> : vector<16x16xf32>
    %7 = vector.multi_reduction <add>, %6, %cst [1] : vector<16x4x16xf32> to vector<16x16xf32>
    %c0_6 = arith.constant 0 : index
    %c0_7 = arith.constant 0 : index
    %c0_8 = arith.constant 0 : index
    %8 = vector.load %arg2[%c0_6, %c0_7, %c0_8] : memref<1x16x16xf32, #tpu.memory_space<vmem>>, vector<1x16x16xf32>
    %9 = vector.shape_cast %8 : vector<1x16x16xf32> to vector<16x16xf32>
    %c0_9 = arith.constant 0 : index
    %c0_10 = arith.constant 0 : index
    %c0_11 = arith.constant 0 : index
    %10 = vector.load %arg5[%c0_9, %c0_10, %c0_11] : memref<1x16x128xf32, #tpu.memory_space<vmem>>, vector<1x16x128xf32>
    %11 = vector.shape_cast %10 : vector<1x16x128xf32> to vector<16x128xf32>
    %cst_12 = arith.constant dense<0.000000e+00> : vector<16x128xf32>
    %12 = tpu.matmul %9, %11, %cst_12 {dimension_numbers = #tpu.dot_dimension_numbers<[1], [0], [0], [1], [0, 0, 1, 1], [], []>} : vector<16x16xf32>, vector<16x128xf32>, vector<16x128xf32> -> vector<16x128xf32>
    %c0_13 = arith.constant 0 : index
    %c0_14 = arith.constant 0 : index
    %c0_15 = arith.constant 0 : index
    %13 = vector.load %arg6[%c0_13, %c0_14, %c0_15] : memref<1x16x128xf32, #tpu.memory_space<vmem>>, vector<1x16x128xf32>
    %14 = vector.shape_cast %13 : vector<1x16x128xf32> to vector<16x128xf32>
    %cst_16 = arith.constant dense<0.000000e+00> : vector<16x128xf32>
    %15 = tpu.matmul %7, %14, %cst_16 {dimension_numbers = #tpu.dot_dimension_numbers<[1], [0], [0], [1], [0, 0, 1, 1], [], []>} : vector<16x16xf32>, vector<16x128xf32>, vector<16x128xf32> -> vector<16x128xf32>
    %16 = arith.addf %12, %15 : vector<16x128xf32>
    %c0_17 = arith.constant 0 : index
    %c0_18 = arith.constant 0 : index
    %c0_19 = arith.constant 0 : index
    %17 = vector.load %arg7[%c0_17, %c0_18, %c0_19] : memref<1x1x128xf32, #tpu.memory_space<vmem>>, vector<1x1x128xf32>
    %18 = vector.shape_cast %17 : vector<1x1x128xf32> to vector<1x128xf32>
    %19 = vector.broadcast %18 : vector<1x128xf32> to vector<16x128xf32>
    %20 = arith.addf %16, %19 : vector<16x128xf32>
    %c0_20 = arith.constant 0 : index
    %c0_21 = arith.constant 0 : index
    %c0_22 = arith.constant 0 : index
    %21 = vector.load %arg8[%c0_20, %c0_21, %c0_22] : memref<1x16x128xf32, #tpu.memory_space<vmem>>, vector<1x16x128xf32>
    %22 = vector.shape_cast %21 : vector<1x16x128xf32> to vector<16x128xf32>
    %23 = vector.shape_cast %20 : vector<16x128xf32> to vector<1x16x128xf32>
    tpu.vector_store %arg8[%c0_20, %c0_21, %c0_22], %23 {strides = array<i32>} : memref<1x16x128xf32, #tpu.memory_space<vmem>>, vector<1x16x128xf32>,
    return
  }
  func.func @transform_0(%arg0: i32, %arg1: i32) -> (i32, i32, i32) {
    %c0_i32 = arith.constant 0 : i32
    %c0_i32_0 = arith.constant 0 : i32
    return %arg0, %arg1, %c0_i32 : i32, i32, i32
  }
  func.func @transform_1(%arg0: i32, %arg1: i32) -> (i32, i32, i32, i32) {
    %c0_i32 = arith.constant 0 : i32
    %c0_i32_0 = arith.constant 0 : i32
    %c0_i32_1 = arith.constant 0 : i32
    return %arg0, %arg1, %c0_i32, %c0_i32_0 : i32, i32, i32, i32
  }
  func.func @transform_2(%arg0: i32, %arg1: i32) -> (i32, i32, i32) {
    %c0_i32 = arith.constant 0 : i32
    %c0_i32_0 = arith.constant 0 : i32
    return %arg0, %arg1, %c0_i32 : i32, i32, i32
  }
  func.func @transform_3(%arg0: i32, %arg1: i32) -> (i32, i32, i32) {
    %c0_i32 = arith.constant 0 : i32
    %c0_i32_0 = arith.constant 0 : i32
    %c0_i32_1 = arith.constant 0 : i32
    return %arg0, %c0_i32, %c0_i32_0 : i32, i32, i32
  }
  func.func @transform_4(%arg0: i32, %arg1: i32) -> (i32, i32, i32) {
    %c0_i32 = arith.constant 0 : i32
    %c0_i32_0 = arith.constant 0 : i32
    %c0_i32_1 = arith.constant 0 : i32
    return %arg0, %c0_i32, %c0_i32_0 : i32, i32, i32
  }
  func.func @transform_5(%arg0: i32, %arg1: i32) -> (i32, i32, i32) {
    %c0_i32 = arith.constant 0 : i32
    %c0_i32_0 = arith.constant 0 : i32
    %c0_i32_1 = arith.constant 0 : i32
    return %arg0, %c0_i32, %c0_i32_0 : i32, i32, i32
  }
  func.func @transform_6(%arg0: i32, %arg1: i32) -> (i32, i32, i32) {
    %c0_i32 = arith.constant 0 : i32
    %c0_i32_0 = arith.constant 0 : i32
    return %arg0, %arg1, %c0_i32 : i32, i32, i32
  }
}

module attributes {stable_mosaic.version = 11 : i64} {
  func.func @_lstm_chunk_kernel(%arg0: i32, %arg1: i32, %arg2: memref<1x8x2x128xf32, #tpu.memory_space<vmem>>, %arg3: memref<1x32x128xf32, #tpu.memory_space<vmem>>, %arg4: memref<1x8x2x32xf32, #tpu.memory_space<vmem>>, %arg5: memref<2x32xf32, #tpu.memory_space<vmem>>, %arg6: memref<2x32xf32, #tpu.memory_space<vmem>>) attributes {dimension_semantics = [#tpu.dimension_semantics<parallel>, #tpu.dimension_semantics<arbitrary>], iteration_bounds = array<i64: 2, 1>, scalar_prefetch = 0 : i64, scratch_operands = 2 : i64, tpu.core_type = #tpu.core_type<tc>, window_params = [{transform_indices = @transform_0, window_bounds = array<i64: 1, 8, 2, 128>}, {transform_indices = @transform_1, window_bounds = array<i64: 1, 32, 128>}, {transform_indices = @transform_2, window_bounds = array<i64: 1, 8, 2, 32>}]} {
    %c0_i32 = arith.constant 0 : i32
    %0 = arith.cmpi eq, %arg1, %c0_i32 : i32
    %1 = arith.extui %0 : i1 to i32
    %c0_i32_0 = arith.constant 0 : i32
    %2 = arith.cmpi ne, %1, %c0_i32_0 : i32
    scf.if %2 {
      %cst_75 = arith.constant 0.000000e+00 : f32
      %201 = vector.broadcast %cst_75 : f32 to vector<2x32xf32>
      %c0_76 = arith.constant 0 : index
      %c0_77 = arith.constant 0 : index
      %202 = vector.load %arg5[%c0_76, %c0_77] : memref<2x32xf32, #tpu.memory_space<vmem>>, vector<2x32xf32>
      tpu.vector_store %arg5[%c0_76, %c0_77], %201 {strides = array<i32>} : memref<2x32xf32, #tpu.memory_space<vmem>>, vector<2x32xf32>,
      %cst_78 = arith.constant 0.000000e+00 : f32
      %203 = vector.broadcast %cst_78 : f32 to vector<2x32xf32>
      %c0_79 = arith.constant 0 : index
      %c0_80 = arith.constant 0 : index
      %204 = vector.load %arg6[%c0_79, %c0_80] : memref<2x32xf32, #tpu.memory_space<vmem>>, vector<2x32xf32>
      tpu.vector_store %arg6[%c0_79, %c0_80], %203 {strides = array<i32>} : memref<2x32xf32, #tpu.memory_space<vmem>>, vector<2x32xf32>,
    } else {
    }
    %c0 = arith.constant 0 : index
    %c0_1 = arith.constant 0 : index
    %c0_2 = arith.constant 0 : index
    %3 = vector.load %arg3[%c0, %c0_1, %c0_2] : memref<1x32x128xf32, #tpu.memory_space<vmem>>, vector<1x32x128xf32>
    %4 = vector.shape_cast %3 : vector<1x32x128xf32> to vector<32x128xf32>
    %c0_3 = arith.constant 0 : index
    %c0_4 = arith.constant 0 : index
    %5 = vector.load %arg5[%c0_3, %c0_4] : memref<2x32xf32, #tpu.memory_space<vmem>>, vector<2x32xf32>
    %c0_5 = arith.constant 0 : index
    %c0_6 = arith.constant 0 : index
    %6 = vector.load %arg6[%c0_5, %c0_6] : memref<2x32xf32, #tpu.memory_space<vmem>>, vector<2x32xf32>
    %c0_i32_7 = arith.constant 0 : i32
    %c0_8 = arith.constant 0 : index
    %7 = arith.index_cast %c0_i32_7 : i32 to index
    %c0_9 = arith.constant 0 : index
    %c0_10 = arith.constant 0 : index
    %8 = vector.load %arg2[%c0_8, %7, %c0_9, %c0_10] : memref<1x8x2x128xf32, #tpu.memory_space<vmem>>, vector<1x1x2x128xf32>
    %9 = vector.shape_cast %8 : vector<1x1x2x128xf32> to vector<2x128xf32>
    %cst = arith.constant dense<0.000000e+00> : vector<2x128xf32>
    %10 = tpu.matmul %5, %4, %cst {dimension_numbers = #tpu.dot_dimension_numbers<[1], [0], [0], [1], [0, 0, 1, 1], [], []>} : vector<2x32xf32>, vector<32x128xf32>, vector<2x128xf32> -> vector<2x128xf32>
    %11 = arith.addf %9, %10 : vector<2x128xf32>
    %12 = arith.negf %11 : vector<2x128xf32>
    %13 = math.exp %12 : vector<2x128xf32>
    %cst_11 = arith.constant 1.000000e+00 : f32
    %14 = vector.broadcast %cst_11 : f32 to vector<2x128xf32>
    %15 = arith.addf %14, %13 : vector<2x128xf32>
    %16 = arith.divf %14, %15 : vector<2x128xf32>
    %17 = math.tanh %11 : vector<2x128xf32>
    %18 = vector.extract_strided_slice %16 {offsets = [0, 0], sizes = [2, 32], strides = [1, 1]} : vector<2x128xf32> to vector<2x32xf32>
    %19 = vector.extract_strided_slice %16 {offsets = [0, 32], sizes = [2, 32], strides = [1, 1]} : vector<2x128xf32> to vector<2x32xf32>
    %20 = vector.extract_strided_slice %17 {offsets = [0, 64], sizes = [2, 32], strides = [1, 1]} : vector<2x128xf32> to vector<2x32xf32>
    %21 = vector.extract_strided_slice %16 {offsets = [0, 96], sizes = [2, 32], strides = [1, 1]} : vector<2x128xf32> to vector<2x32xf32>
    %22 = arith.mulf %19, %6 : vector<2x32xf32>
    %23 = arith.mulf %18, %20 : vector<2x32xf32>
    %24 = arith.addf %22, %23 : vector<2x32xf32>
    %25 = math.tanh %24 : vector<2x32xf32>
    %26 = arith.mulf %21, %25 : vector<2x32xf32>
    %c0_12 = arith.constant 0 : index
    %27 = arith.index_cast %c0_i32_7 : i32 to index
    %c0_13 = arith.constant 0 : index
    %c0_14 = arith.constant 0 : index
    %28 = vector.load %arg4[%c0_12, %27, %c0_13, %c0_14] : memref<1x8x2x32xf32, #tpu.memory_space<vmem>>, vector<1x1x2x32xf32>
    %29 = vector.shape_cast %28 : vector<1x1x2x32xf32> to vector<2x32xf32>
    %30 = vector.shape_cast %26 : vector<2x32xf32> to vector<1x1x2x32xf32>
    tpu.vector_store %arg4[%c0_12, %27, %c0_13, %c0_14], %30 {strides = array<i32>} : memref<1x8x2x32xf32, #tpu.memory_space<vmem>>, vector<1x1x2x32xf32>,
    %c1_i32 = arith.constant 1 : i32
    %c0_15 = arith.constant 0 : index
    %31 = arith.index_cast %c1_i32 : i32 to index
    %c0_16 = arith.constant 0 : index
    %c0_17 = arith.constant 0 : index
    %32 = vector.load %arg2[%c0_15, %31, %c0_16, %c0_17] : memref<1x8x2x128xf32, #tpu.memory_space<vmem>>, vector<1x1x2x128xf32>
    %33 = vector.shape_cast %32 : vector<1x1x2x128xf32> to vector<2x128xf32>
    %cst_18 = arith.constant dense<0.000000e+00> : vector<2x128xf32>
    %34 = tpu.matmul %26, %4, %cst_18 {dimension_numbers = #tpu.dot_dimension_numbers<[1], [0], [0], [1], [0, 0, 1, 1], [], []>} : vector<2x32xf32>, vector<32x128xf32>, vector<2x128xf32> -> vector<2x128xf32>
    %35 = arith.addf %33, %34 : vector<2x128xf32>
    %36 = arith.negf %35 : vector<2x128xf32>
    %37 = math.exp %36 : vector<2x128xf32>
    %cst_19 = arith.constant 1.000000e+00 : f32
    %38 = vector.broadcast %cst_19 : f32 to vector<2x128xf32>
    %39 = arith.addf %38, %37 : vector<2x128xf32>
    %40 = arith.divf %38, %39 : vector<2x128xf32>
    %41 = math.tanh %35 : vector<2x128xf32>
    %42 = vector.extract_strided_slice %40 {offsets = [0, 0], sizes = [2, 32], strides = [1, 1]} : vector<2x128xf32> to vector<2x32xf32>
    %43 = vector.extract_strided_slice %40 {offsets = [0, 32], sizes = [2, 32], strides = [1, 1]} : vector<2x128xf32> to vector<2x32xf32>
    %44 = vector.extract_strided_slice %41 {offsets = [0, 64], sizes = [2, 32], strides = [1, 1]} : vector<2x128xf32> to vector<2x32xf32>
    %45 = vector.extract_strided_slice %40 {offsets = [0, 96], sizes = [2, 32], strides = [1, 1]} : vector<2x128xf32> to vector<2x32xf32>
    %46 = arith.mulf %43, %24 : vector<2x32xf32>
    %47 = arith.mulf %42, %44 : vector<2x32xf32>
    %48 = arith.addf %46, %47 : vector<2x32xf32>
    %49 = math.tanh %48 : vector<2x32xf32>
    %50 = arith.mulf %45, %49 : vector<2x32xf32>
    %c0_20 = arith.constant 0 : index
    %51 = arith.index_cast %c1_i32 : i32 to index
    %c0_21 = arith.constant 0 : index
    %c0_22 = arith.constant 0 : index
    %52 = vector.load %arg4[%c0_20, %51, %c0_21, %c0_22] : memref<1x8x2x32xf32, #tpu.memory_space<vmem>>, vector<1x1x2x32xf32>
    %53 = vector.shape_cast %52 : vector<1x1x2x32xf32> to vector<2x32xf32>
    %54 = vector.shape_cast %50 : vector<2x32xf32> to vector<1x1x2x32xf32>
    tpu.vector_store %arg4[%c0_20, %51, %c0_21, %c0_22], %54 {strides = array<i32>} : memref<1x8x2x32xf32, #tpu.memory_space<vmem>>, vector<1x1x2x32xf32>,
    %c2_i32 = arith.constant 2 : i32
    %c0_23 = arith.constant 0 : index
    %55 = arith.index_cast %c2_i32 : i32 to index
    %c0_24 = arith.constant 0 : index
    %c0_25 = arith.constant 0 : index
    %56 = vector.load %arg2[%c0_23, %55, %c0_24, %c0_25] : memref<1x8x2x128xf32, #tpu.memory_space<vmem>>, vector<1x1x2x128xf32>
    %57 = vector.shape_cast %56 : vector<1x1x2x128xf32> to vector<2x128xf32>
    %cst_26 = arith.constant dense<0.000000e+00> : vector<2x128xf32>
    %58 = tpu.matmul %50, %4, %cst_26 {dimension_numbers = #tpu.dot_dimension_numbers<[1], [0], [0], [1], [0, 0, 1, 1], [], []>} : vector<2x32xf32>, vector<32x128xf32>, vector<2x128xf32> -> vector<2x128xf32>
    %59 = arith.addf %57, %58 : vector<2x128xf32>
    %60 = arith.negf %59 : vector<2x128xf32>
    %61 = math.exp %60 : vector<2x128xf32>
    %cst_27 = arith.constant 1.000000e+00 : f32
    %62 = vector.broadcast %cst_27 : f32 to vector<2x128xf32>
    %63 = arith.addf %62, %61 : vector<2x128xf32>
    %64 = arith.divf %62, %63 : vector<2x128xf32>
    %65 = math.tanh %59 : vector<2x128xf32>
    %66 = vector.extract_strided_slice %64 {offsets = [0, 0], sizes = [2, 32], strides = [1, 1]} : vector<2x128xf32> to vector<2x32xf32>
    %67 = vector.extract_strided_slice %64 {offsets = [0, 32], sizes = [2, 32], strides = [1, 1]} : vector<2x128xf32> to vector<2x32xf32>
    %68 = vector.extract_strided_slice %65 {offsets = [0, 64], sizes = [2, 32], strides = [1, 1]} : vector<2x128xf32> to vector<2x32xf32>
    %69 = vector.extract_strided_slice %64 {offsets = [0, 96], sizes = [2, 32], strides = [1, 1]} : vector<2x128xf32> to vector<2x32xf32>
    %70 = arith.mulf %67, %48 : vector<2x32xf32>
    %71 = arith.mulf %66, %68 : vector<2x32xf32>
    %72 = arith.addf %70, %71 : vector<2x32xf32>
    %73 = math.tanh %72 : vector<2x32xf32>
    %74 = arith.mulf %69, %73 : vector<2x32xf32>
    %c0_28 = arith.constant 0 : index
    %75 = arith.index_cast %c2_i32 : i32 to index
    %c0_29 = arith.constant 0 : index
    %c0_30 = arith.constant 0 : index
    %76 = vector.load %arg4[%c0_28, %75, %c0_29, %c0_30] : memref<1x8x2x32xf32, #tpu.memory_space<vmem>>, vector<1x1x2x32xf32>
    %77 = vector.shape_cast %76 : vector<1x1x2x32xf32> to vector<2x32xf32>
    %78 = vector.shape_cast %74 : vector<2x32xf32> to vector<1x1x2x32xf32>
    tpu.vector_store %arg4[%c0_28, %75, %c0_29, %c0_30], %78 {strides = array<i32>} : memref<1x8x2x32xf32, #tpu.memory_space<vmem>>, vector<1x1x2x32xf32>,
    %c3_i32 = arith.constant 3 : i32
    %c0_31 = arith.constant 0 : index
    %79 = arith.index_cast %c3_i32 : i32 to index
    %c0_32 = arith.constant 0 : index
    %c0_33 = arith.constant 0 : index
    %80 = vector.load %arg2[%c0_31, %79, %c0_32, %c0_33] : memref<1x8x2x128xf32, #tpu.memory_space<vmem>>, vector<1x1x2x128xf32>
    %81 = vector.shape_cast %80 : vector<1x1x2x128xf32> to vector<2x128xf32>
    %cst_34 = arith.constant dense<0.000000e+00> : vector<2x128xf32>
    %82 = tpu.matmul %74, %4, %cst_34 {dimension_numbers = #tpu.dot_dimension_numbers<[1], [0], [0], [1], [0, 0, 1, 1], [], []>} : vector<2x32xf32>, vector<32x128xf32>, vector<2x128xf32> -> vector<2x128xf32>
    %83 = arith.addf %81, %82 : vector<2x128xf32>
    %84 = arith.negf %83 : vector<2x128xf32>
    %85 = math.exp %84 : vector<2x128xf32>
    %cst_35 = arith.constant 1.000000e+00 : f32
    %86 = vector.broadcast %cst_35 : f32 to vector<2x128xf32>
    %87 = arith.addf %86, %85 : vector<2x128xf32>
    %88 = arith.divf %86, %87 : vector<2x128xf32>
    %89 = math.tanh %83 : vector<2x128xf32>
    %90 = vector.extract_strided_slice %88 {offsets = [0, 0], sizes = [2, 32], strides = [1, 1]} : vector<2x128xf32> to vector<2x32xf32>
    %91 = vector.extract_strided_slice %88 {offsets = [0, 32], sizes = [2, 32], strides = [1, 1]} : vector<2x128xf32> to vector<2x32xf32>
    %92 = vector.extract_strided_slice %89 {offsets = [0, 64], sizes = [2, 32], strides = [1, 1]} : vector<2x128xf32> to vector<2x32xf32>
    %93 = vector.extract_strided_slice %88 {offsets = [0, 96], sizes = [2, 32], strides = [1, 1]} : vector<2x128xf32> to vector<2x32xf32>
    %94 = arith.mulf %91, %72 : vector<2x32xf32>
    %95 = arith.mulf %90, %92 : vector<2x32xf32>
    %96 = arith.addf %94, %95 : vector<2x32xf32>
    %97 = math.tanh %96 : vector<2x32xf32>
    %98 = arith.mulf %93, %97 : vector<2x32xf32>
    %c0_36 = arith.constant 0 : index
    %99 = arith.index_cast %c3_i32 : i32 to index
    %c0_37 = arith.constant 0 : index
    %c0_38 = arith.constant 0 : index
    %100 = vector.load %arg4[%c0_36, %99, %c0_37, %c0_38] : memref<1x8x2x32xf32, #tpu.memory_space<vmem>>, vector<1x1x2x32xf32>
    %101 = vector.shape_cast %100 : vector<1x1x2x32xf32> to vector<2x32xf32>
    %102 = vector.shape_cast %98 : vector<2x32xf32> to vector<1x1x2x32xf32>
    tpu.vector_store %arg4[%c0_36, %99, %c0_37, %c0_38], %102 {strides = array<i32>} : memref<1x8x2x32xf32, #tpu.memory_space<vmem>>, vector<1x1x2x32xf32>,
    %c4_i32 = arith.constant 4 : i32
    %c0_39 = arith.constant 0 : index
    %103 = arith.index_cast %c4_i32 : i32 to index
    %c0_40 = arith.constant 0 : index
    %c0_41 = arith.constant 0 : index
    %104 = vector.load %arg2[%c0_39, %103, %c0_40, %c0_41] : memref<1x8x2x128xf32, #tpu.memory_space<vmem>>, vector<1x1x2x128xf32>
    %105 = vector.shape_cast %104 : vector<1x1x2x128xf32> to vector<2x128xf32>
    %cst_42 = arith.constant dense<0.000000e+00> : vector<2x128xf32>
    %106 = tpu.matmul %98, %4, %cst_42 {dimension_numbers = #tpu.dot_dimension_numbers<[1], [0], [0], [1], [0, 0, 1, 1], [], []>} : vector<2x32xf32>, vector<32x128xf32>, vector<2x128xf32> -> vector<2x128xf32>
    %107 = arith.addf %105, %106 : vector<2x128xf32>
    %108 = arith.negf %107 : vector<2x128xf32>
    %109 = math.exp %108 : vector<2x128xf32>
    %cst_43 = arith.constant 1.000000e+00 : f32
    %110 = vector.broadcast %cst_43 : f32 to vector<2x128xf32>
    %111 = arith.addf %110, %109 : vector<2x128xf32>
    %112 = arith.divf %110, %111 : vector<2x128xf32>
    %113 = math.tanh %107 : vector<2x128xf32>
    %114 = vector.extract_strided_slice %112 {offsets = [0, 0], sizes = [2, 32], strides = [1, 1]} : vector<2x128xf32> to vector<2x32xf32>
    %115 = vector.extract_strided_slice %112 {offsets = [0, 32], sizes = [2, 32], strides = [1, 1]} : vector<2x128xf32> to vector<2x32xf32>
    %116 = vector.extract_strided_slice %113 {offsets = [0, 64], sizes = [2, 32], strides = [1, 1]} : vector<2x128xf32> to vector<2x32xf32>
    %117 = vector.extract_strided_slice %112 {offsets = [0, 96], sizes = [2, 32], strides = [1, 1]} : vector<2x128xf32> to vector<2x32xf32>
    %118 = arith.mulf %115, %96 : vector<2x32xf32>
    %119 = arith.mulf %114, %116 : vector<2x32xf32>
    %120 = arith.addf %118, %119 : vector<2x32xf32>
    %121 = math.tanh %120 : vector<2x32xf32>
    %122 = arith.mulf %117, %121 : vector<2x32xf32>
    %c0_44 = arith.constant 0 : index
    %123 = arith.index_cast %c4_i32 : i32 to index
    %c0_45 = arith.constant 0 : index
    %c0_46 = arith.constant 0 : index
    %124 = vector.load %arg4[%c0_44, %123, %c0_45, %c0_46] : memref<1x8x2x32xf32, #tpu.memory_space<vmem>>, vector<1x1x2x32xf32>
    %125 = vector.shape_cast %124 : vector<1x1x2x32xf32> to vector<2x32xf32>
    %126 = vector.shape_cast %122 : vector<2x32xf32> to vector<1x1x2x32xf32>
    tpu.vector_store %arg4[%c0_44, %123, %c0_45, %c0_46], %126 {strides = array<i32>} : memref<1x8x2x32xf32, #tpu.memory_space<vmem>>, vector<1x1x2x32xf32>,
    %c5_i32 = arith.constant 5 : i32
    %c0_47 = arith.constant 0 : index
    %127 = arith.index_cast %c5_i32 : i32 to index
    %c0_48 = arith.constant 0 : index
    %c0_49 = arith.constant 0 : index
    %128 = vector.load %arg2[%c0_47, %127, %c0_48, %c0_49] : memref<1x8x2x128xf32, #tpu.memory_space<vmem>>, vector<1x1x2x128xf32>
    %129 = vector.shape_cast %128 : vector<1x1x2x128xf32> to vector<2x128xf32>
    %cst_50 = arith.constant dense<0.000000e+00> : vector<2x128xf32>
    %130 = tpu.matmul %122, %4, %cst_50 {dimension_numbers = #tpu.dot_dimension_numbers<[1], [0], [0], [1], [0, 0, 1, 1], [], []>} : vector<2x32xf32>, vector<32x128xf32>, vector<2x128xf32> -> vector<2x128xf32>
    %131 = arith.addf %129, %130 : vector<2x128xf32>
    %132 = arith.negf %131 : vector<2x128xf32>
    %133 = math.exp %132 : vector<2x128xf32>
    %cst_51 = arith.constant 1.000000e+00 : f32
    %134 = vector.broadcast %cst_51 : f32 to vector<2x128xf32>
    %135 = arith.addf %134, %133 : vector<2x128xf32>
    %136 = arith.divf %134, %135 : vector<2x128xf32>
    %137 = math.tanh %131 : vector<2x128xf32>
    %138 = vector.extract_strided_slice %136 {offsets = [0, 0], sizes = [2, 32], strides = [1, 1]} : vector<2x128xf32> to vector<2x32xf32>
    %139 = vector.extract_strided_slice %136 {offsets = [0, 32], sizes = [2, 32], strides = [1, 1]} : vector<2x128xf32> to vector<2x32xf32>
    %140 = vector.extract_strided_slice %137 {offsets = [0, 64], sizes = [2, 32], strides = [1, 1]} : vector<2x128xf32> to vector<2x32xf32>
    %141 = vector.extract_strided_slice %136 {offsets = [0, 96], sizes = [2, 32], strides = [1, 1]} : vector<2x128xf32> to vector<2x32xf32>
    %142 = arith.mulf %139, %120 : vector<2x32xf32>
    %143 = arith.mulf %138, %140 : vector<2x32xf32>
    %144 = arith.addf %142, %143 : vector<2x32xf32>
    %145 = math.tanh %144 : vector<2x32xf32>
    %146 = arith.mulf %141, %145 : vector<2x32xf32>
    %c0_52 = arith.constant 0 : index
    %147 = arith.index_cast %c5_i32 : i32 to index
    %c0_53 = arith.constant 0 : index
    %c0_54 = arith.constant 0 : index
    %148 = vector.load %arg4[%c0_52, %147, %c0_53, %c0_54] : memref<1x8x2x32xf32, #tpu.memory_space<vmem>>, vector<1x1x2x32xf32>
    %149 = vector.shape_cast %148 : vector<1x1x2x32xf32> to vector<2x32xf32>
    %150 = vector.shape_cast %146 : vector<2x32xf32> to vector<1x1x2x32xf32>
    tpu.vector_store %arg4[%c0_52, %147, %c0_53, %c0_54], %150 {strides = array<i32>} : memref<1x8x2x32xf32, #tpu.memory_space<vmem>>, vector<1x1x2x32xf32>,
    %c6_i32 = arith.constant 6 : i32
    %c0_55 = arith.constant 0 : index
    %151 = arith.index_cast %c6_i32 : i32 to index
    %c0_56 = arith.constant 0 : index
    %c0_57 = arith.constant 0 : index
    %152 = vector.load %arg2[%c0_55, %151, %c0_56, %c0_57] : memref<1x8x2x128xf32, #tpu.memory_space<vmem>>, vector<1x1x2x128xf32>
    %153 = vector.shape_cast %152 : vector<1x1x2x128xf32> to vector<2x128xf32>
    %cst_58 = arith.constant dense<0.000000e+00> : vector<2x128xf32>
    %154 = tpu.matmul %146, %4, %cst_58 {dimension_numbers = #tpu.dot_dimension_numbers<[1], [0], [0], [1], [0, 0, 1, 1], [], []>} : vector<2x32xf32>, vector<32x128xf32>, vector<2x128xf32> -> vector<2x128xf32>
    %155 = arith.addf %153, %154 : vector<2x128xf32>
    %156 = arith.negf %155 : vector<2x128xf32>
    %157 = math.exp %156 : vector<2x128xf32>
    %cst_59 = arith.constant 1.000000e+00 : f32
    %158 = vector.broadcast %cst_59 : f32 to vector<2x128xf32>
    %159 = arith.addf %158, %157 : vector<2x128xf32>
    %160 = arith.divf %158, %159 : vector<2x128xf32>
    %161 = math.tanh %155 : vector<2x128xf32>
    %162 = vector.extract_strided_slice %160 {offsets = [0, 0], sizes = [2, 32], strides = [1, 1]} : vector<2x128xf32> to vector<2x32xf32>
    %163 = vector.extract_strided_slice %160 {offsets = [0, 32], sizes = [2, 32], strides = [1, 1]} : vector<2x128xf32> to vector<2x32xf32>
    %164 = vector.extract_strided_slice %161 {offsets = [0, 64], sizes = [2, 32], strides = [1, 1]} : vector<2x128xf32> to vector<2x32xf32>
    %165 = vector.extract_strided_slice %160 {offsets = [0, 96], sizes = [2, 32], strides = [1, 1]} : vector<2x128xf32> to vector<2x32xf32>
    %166 = arith.mulf %163, %144 : vector<2x32xf32>
    %167 = arith.mulf %162, %164 : vector<2x32xf32>
    %168 = arith.addf %166, %167 : vector<2x32xf32>
    %169 = math.tanh %168 : vector<2x32xf32>
    %170 = arith.mulf %165, %169 : vector<2x32xf32>
    %c0_60 = arith.constant 0 : index
    %171 = arith.index_cast %c6_i32 : i32 to index
    %c0_61 = arith.constant 0 : index
    %c0_62 = arith.constant 0 : index
    %172 = vector.load %arg4[%c0_60, %171, %c0_61, %c0_62] : memref<1x8x2x32xf32, #tpu.memory_space<vmem>>, vector<1x1x2x32xf32>
    %173 = vector.shape_cast %172 : vector<1x1x2x32xf32> to vector<2x32xf32>
    %174 = vector.shape_cast %170 : vector<2x32xf32> to vector<1x1x2x32xf32>
    tpu.vector_store %arg4[%c0_60, %171, %c0_61, %c0_62], %174 {strides = array<i32>} : memref<1x8x2x32xf32, #tpu.memory_space<vmem>>, vector<1x1x2x32xf32>,
    %c7_i32 = arith.constant 7 : i32
    %c0_63 = arith.constant 0 : index
    %175 = arith.index_cast %c7_i32 : i32 to index
    %c0_64 = arith.constant 0 : index
    %c0_65 = arith.constant 0 : index
    %176 = vector.load %arg2[%c0_63, %175, %c0_64, %c0_65] : memref<1x8x2x128xf32, #tpu.memory_space<vmem>>, vector<1x1x2x128xf32>
    %177 = vector.shape_cast %176 : vector<1x1x2x128xf32> to vector<2x128xf32>
    %cst_66 = arith.constant dense<0.000000e+00> : vector<2x128xf32>
    %178 = tpu.matmul %170, %4, %cst_66 {dimension_numbers = #tpu.dot_dimension_numbers<[1], [0], [0], [1], [0, 0, 1, 1], [], []>} : vector<2x32xf32>, vector<32x128xf32>, vector<2x128xf32> -> vector<2x128xf32>
    %179 = arith.addf %177, %178 : vector<2x128xf32>
    %180 = arith.negf %179 : vector<2x128xf32>
    %181 = math.exp %180 : vector<2x128xf32>
    %cst_67 = arith.constant 1.000000e+00 : f32
    %182 = vector.broadcast %cst_67 : f32 to vector<2x128xf32>
    %183 = arith.addf %182, %181 : vector<2x128xf32>
    %184 = arith.divf %182, %183 : vector<2x128xf32>
    %185 = math.tanh %179 : vector<2x128xf32>
    %186 = vector.extract_strided_slice %184 {offsets = [0, 0], sizes = [2, 32], strides = [1, 1]} : vector<2x128xf32> to vector<2x32xf32>
    %187 = vector.extract_strided_slice %184 {offsets = [0, 32], sizes = [2, 32], strides = [1, 1]} : vector<2x128xf32> to vector<2x32xf32>
    %188 = vector.extract_strided_slice %185 {offsets = [0, 64], sizes = [2, 32], strides = [1, 1]} : vector<2x128xf32> to vector<2x32xf32>
    %189 = vector.extract_strided_slice %184 {offsets = [0, 96], sizes = [2, 32], strides = [1, 1]} : vector<2x128xf32> to vector<2x32xf32>
    %190 = arith.mulf %187, %168 : vector<2x32xf32>
    %191 = arith.mulf %186, %188 : vector<2x32xf32>
    %192 = arith.addf %190, %191 : vector<2x32xf32>
    %193 = math.tanh %192 : vector<2x32xf32>
    %194 = arith.mulf %189, %193 : vector<2x32xf32>
    %c0_68 = arith.constant 0 : index
    %195 = arith.index_cast %c7_i32 : i32 to index
    %c0_69 = arith.constant 0 : index
    %c0_70 = arith.constant 0 : index
    %196 = vector.load %arg4[%c0_68, %195, %c0_69, %c0_70] : memref<1x8x2x32xf32, #tpu.memory_space<vmem>>, vector<1x1x2x32xf32>
    %197 = vector.shape_cast %196 : vector<1x1x2x32xf32> to vector<2x32xf32>
    %198 = vector.shape_cast %194 : vector<2x32xf32> to vector<1x1x2x32xf32>
    tpu.vector_store %arg4[%c0_68, %195, %c0_69, %c0_70], %198 {strides = array<i32>} : memref<1x8x2x32xf32, #tpu.memory_space<vmem>>, vector<1x1x2x32xf32>,
    %c8_i32 = arith.constant 8 : i32
    %c0_71 = arith.constant 0 : index
    %c0_72 = arith.constant 0 : index
    %199 = vector.load %arg5[%c0_71, %c0_72] : memref<2x32xf32, #tpu.memory_space<vmem>>, vector<2x32xf32>
    tpu.vector_store %arg5[%c0_71, %c0_72], %194 {strides = array<i32>} : memref<2x32xf32, #tpu.memory_space<vmem>>, vector<2x32xf32>,
    %c0_73 = arith.constant 0 : index
    %c0_74 = arith.constant 0 : index
    %200 = vector.load %arg6[%c0_73, %c0_74] : memref<2x32xf32, #tpu.memory_space<vmem>>, vector<2x32xf32>
    tpu.vector_store %arg6[%c0_73, %c0_74], %192 {strides = array<i32>} : memref<2x32xf32, #tpu.memory_space<vmem>>, vector<2x32xf32>,
    return
  }
  func.func @transform_0(%arg0: i32, %arg1: i32) -> (i32, i32, i32, i32) {
    %c0_i32 = arith.constant 0 : i32
    %c0_i32_0 = arith.constant 0 : i32
    %c0_i32_1 = arith.constant 0 : i32
    return %arg0, %arg1, %c0_i32, %c0_i32_0 : i32, i32, i32, i32
  }
  func.func @transform_1(%arg0: i32, %arg1: i32) -> (i32, i32, i32) {
    %c0_i32 = arith.constant 0 : i32
    %c0_i32_0 = arith.constant 0 : i32
    %c0_i32_1 = arith.constant 0 : i32
    return %arg0, %c0_i32, %c0_i32_0 : i32, i32, i32
  }
  func.func @transform_2(%arg0: i32, %arg1: i32) -> (i32, i32, i32, i32) {
    %c0_i32 = arith.constant 0 : i32
    %c0_i32_0 = arith.constant 0 : i32
    %c0_i32_1 = arith.constant 0 : i32
    return %arg0, %arg1, %c0_i32, %c0_i32_0 : i32, i32, i32, i32
  }
}

module attributes {stable_mosaic.version = 11 : i64} {
  func.func @_tag_kernel(%arg0: i32, %arg1: memref<16x32xf32, #tpu.memory_space<vmem>>, %arg2: memref<16x32xf32, #tpu.memory_space<vmem>>, %arg3: memref<32x128xf32, #tpu.memory_space<vmem>>, %arg4: memref<32x128xf32, #tpu.memory_space<vmem>>, %arg5: memref<1x128xf32, #tpu.memory_space<vmem>>, %arg6: memref<16x128xf32, #tpu.memory_space<vmem>>) attributes {dimension_semantics = [#tpu.dimension_semantics<parallel>], iteration_bounds = array<i64: 1>, scalar_prefetch = 0 : i64, scratch_operands = 0 : i64, tpu.core_type = #tpu.core_type<tc>, window_params = [{transform_indices = @transform_0, window_bounds = array<i64: 16, 32>}, {transform_indices = @transform_1, window_bounds = array<i64: 16, 32>}, {pipeline_mode = #tpu.pipeline_mode<synchronous>, transform_indices = @transform_2, window_bounds = array<i64: 32, 128>}, {pipeline_mode = #tpu.pipeline_mode<synchronous>, transform_indices = @transform_3, window_bounds = array<i64: 32, 128>}, {pipeline_mode = #tpu.pipeline_mode<synchronous>, transform_indices = @transform_4, window_bounds = array<i64: 1, 128>}, {transform_indices = @transform_5, window_bounds = array<i64: 16, 128>}]} {
    %c0 = arith.constant 0 : index
    %c0_0 = arith.constant 0 : index
    %0 = vector.load %arg1[%c0, %c0_0] : memref<16x32xf32, #tpu.memory_space<vmem>>, vector<16x32xf32>
    %c0_1 = arith.constant 0 : index
    %c0_2 = arith.constant 0 : index
    %1 = vector.load %arg3[%c0_1, %c0_2] : memref<32x128xf32, #tpu.memory_space<vmem>>, vector<32x128xf32>
    %cst = arith.constant dense<0.000000e+00> : vector<16x128xf32>
    %2 = tpu.matmul %0, %1, %cst {dimension_numbers = #tpu.dot_dimension_numbers<[1], [0], [0], [1], [0, 0, 1, 1], [], []>} : vector<16x32xf32>, vector<32x128xf32>, vector<16x128xf32> -> vector<16x128xf32>
    %c0_3 = arith.constant 0 : index
    %c0_4 = arith.constant 0 : index
    %3 = vector.load %arg2[%c0_3, %c0_4] : memref<16x32xf32, #tpu.memory_space<vmem>>, vector<16x32xf32>
    %c0_5 = arith.constant 0 : index
    %c0_6 = arith.constant 0 : index
    %4 = vector.load %arg4[%c0_5, %c0_6] : memref<32x128xf32, #tpu.memory_space<vmem>>, vector<32x128xf32>
    %cst_7 = arith.constant dense<0.000000e+00> : vector<16x128xf32>
    %5 = tpu.matmul %3, %4, %cst_7 {dimension_numbers = #tpu.dot_dimension_numbers<[1], [0], [0], [1], [0, 0, 1, 1], [], []>} : vector<16x32xf32>, vector<32x128xf32>, vector<16x128xf32> -> vector<16x128xf32>
    %6 = arith.addf %2, %5 : vector<16x128xf32>
    %c0_8 = arith.constant 0 : index
    %c0_9 = arith.constant 0 : index
    %7 = vector.load %arg5[%c0_8, %c0_9] : memref<1x128xf32, #tpu.memory_space<vmem>>, vector<1x128xf32>
    %8 = vector.broadcast %7 : vector<1x128xf32> to vector<16x128xf32>
    %9 = arith.addf %6, %8 : vector<16x128xf32>
    %c0_10 = arith.constant 0 : index
    %c0_11 = arith.constant 0 : index
    %10 = vector.load %arg6[%c0_10, %c0_11] : memref<16x128xf32, #tpu.memory_space<vmem>>, vector<16x128xf32>
    tpu.vector_store %arg6[%c0_10, %c0_11], %9 {strides = array<i32>} : memref<16x128xf32, #tpu.memory_space<vmem>>, vector<16x128xf32>,
    return
  }
  func.func @transform_0(%arg0: i32) -> (i32, i32) {
    %c0_i32 = arith.constant 0 : i32
    %c0_i32_0 = arith.constant 0 : i32
    return %arg0, %c0_i32 : i32, i32
  }
  func.func @transform_1(%arg0: i32) -> (i32, i32) {
    %c0_i32 = arith.constant 0 : i32
    %c0_i32_0 = arith.constant 0 : i32
    return %arg0, %c0_i32 : i32, i32
  }
  func.func @transform_2(%arg0: i32) -> (i32, i32) {
    %c0_i32 = arith.constant 0 : i32
    %c0_i32_0 = arith.constant 0 : i32
    %c0_i32_1 = arith.constant 0 : i32
    return %c0_i32, %c0_i32_0 : i32, i32
  }
  func.func @transform_3(%arg0: i32) -> (i32, i32) {
    %c0_i32 = arith.constant 0 : i32
    %c0_i32_0 = arith.constant 0 : i32
    %c0_i32_1 = arith.constant 0 : i32
    return %c0_i32, %c0_i32_0 : i32, i32
  }
  func.func @transform_4(%arg0: i32) -> (i32, i32) {
    %c0_i32 = arith.constant 0 : i32
    %c0_i32_0 = arith.constant 0 : i32
    %c0_i32_1 = arith.constant 0 : i32
    return %c0_i32, %c0_i32_0 : i32, i32
  }
  func.func @transform_5(%arg0: i32) -> (i32, i32) {
    %c0_i32 = arith.constant 0 : i32
    %c0_i32_0 = arith.constant 0 : i32
    return %arg0, %c0_i32 : i32, i32
  }
}

</mosaic_0001>

<bundles_post_ra>
// kernel: custom-call.16
= control target key start
LH: loop header
LB: loop body
LE: loop exit
PB: predicated region body
PF: predicated region fallthrough
CT: control target
= control target key end

     0   :  { %s6_s0 = inlined_call_operand.vmem [shape: s32[7,2,12], index: 0, kind: output, shape index: {}]  }

// kernel: cw_ner_forward.5
= control target key start
LH: loop header
LB: loop body
LE: loop exit
PB: predicated region body
PF: predicated region fallthrough
CT: control target
= control target key end

     0   :  { %vm32_vm0 = vcmask 261120   ;;  %s191_s3 = inlined_call_operand.vmem [shape: f32[32,128], index: 3, kind: input, shape index: {}]   ;;  %s192_s2 = inlined_call_operand.vmem [shape: f32[32,128], index: 2, kind: input, shape index: {}]   ;;  %s193_s1 = inlined_call_operand.vmem [shape: f32[16,32], index: 1, kind: input, shape index: {}]   ;;  %s194_s0 = inlined_call_operand.vmem [shape: f32[16,32], index: 0, kind: input, shape index: {}]   ;;  %s195_s4 = inlined_call_operand.vmem [shape: f32[1,128], index: 4, kind: input, shape index: {}]   ;;  %s196_s5 = inlined_call_operand.vmem [shape: f32[16,128], index: 5, kind: output, shape index: {}]  }
   0x1   :  { %v31_v0 = vld [vmem:[%s191_s3 + $0x18] sm:$0xff]  ;;  %v30_v2 = vld [vmem:[%s191_s3 + $0x10] sm:$0xff]  ;;  %v29_v4 = vld [vmem:[%s191_s3 + $0x8] sm:$0xff] }
   0x2   :  { %v25_v1 = vld [vmem:[%s192_s2 + $0x18] sm:$0xff]  ;;  %107 = vmatpush.msra.mxu2 %v31_v0  ;;  %v24_v3 = vld [vmem:[%s192_s2 + $0x10] sm:$0xff]  ;;  %v23_v5 = vld [vmem:[%s192_s2 + $0x8] sm:$0xff]  ;;  %51 = vmatpush.msra.mxu0 %v31_v0 }
   0x3   :  { %111 = vmatpush.msra.mxu3 %v25_v1  ;;  %80 = vmatpush.msra.mxu1 %v25_v1  ;;  %v28_v6 = vld [vmem:[%s191_s3] sm:$0xff]  ;;  %v27_v8 = vld [vmem:[%s193_s1 + $0x8] sm:$0xff] }
   0x4   :  { %108 = vmatpush.msra.mxu2 %v30_v2  ;;  %v22_v7 = vld [vmem:[%s192_s2] sm:$0xff]  ;;  %52 = vmatpush.msra.mxu0 %v30_v2  ;;  %v21_v9 = vld [vmem:[%s194_s0 + $0x8] sm:$0xff] }
   0x5   :  { %112 = vmatpush.msra.mxu3 %v24_v3  ;;  %81 = vmatpush.msra.mxu1 %v24_v3  ;;  %v26_v10 = vld [vmem:[%s193_s1] sm:$0xff] }
   0x6   :  { %109 = vmatpush.msra.mxu2 %v29_v4  ;;  %53 = vmatpush.msra.mxu0 %v29_v4  ;;  %v20_v11 = vld [vmem:[%s194_s0] sm:$0xff] }
   0x7   :  { %113 = vmatpush.msra.mxu3 %v23_v5  ;;  %82 = vmatpush.msra.mxu1 %v23_v5  ;;  %v115_v12 = vld [vmem:[%s195_s4] ss:$0 sm:$0xff] }
   0x8   :  { %110 = vmatpush.msra.mxu2 %v28_v6  ;;  %54 = vmatpush.msra.mxu0 %v28_v6 }
   0x9   :  { %114 = vmatpush.msra.mxu3 %v22_v7  ;;  %104 = vmatmul.msk.f32.vlgmr.msra.gmra.mxu2 %vm32_vm0, %v27_v8 }
   0xa   :  { %106 = vmatmul.msk.f32.vlgmr.msra.gmra.mxu3 %vm32_vm0, %v21_v9  ;;  %83 = vmatpush.msra.mxu1 %v22_v7 }
   0xb   :  { %103 = vmatmul.msk.f32.vlgmr.msra.gmra.mxu0 %vm32_vm0, %v26_v10  ;;  %105 = vmatmul.msk.f32.vlgmr.msra.gmra.mxu1 %vm32_vm0, %v20_v11 }
  0x88   :  { %v56_v13 = vpop.f32.mrf.mxu0  ;;  %v85_v14 = vpop.f32.mrf.mxu1 }
  0x89   :  { %v86_v15 = vadd.f32 %v85_v14, %v56_v13 }
  0x8b   :  { %v95_v16 = vadd.f32 %v115_v12, %v86_v15 }
  0x8c   :  { %v59_v17 = vpop.f32.mrf.mxu2 }
  0x8d   :  { %v88_v18 = vpop.f32.mrf.mxu3  ;;  %97 = vst [vmem:[%s196_s5] sm:$0xff] %v95_v16 }
  0x8e   :  { %v89_v19 = vadd.f32 %v88_v18, %v59_v17 }
  0x90   :  { %v96_v20 = vadd.f32 %v115_v12, %v89_v19 }
  0x92   :  { %98 = vst [vmem:[%s196_s5 + $0x8] sm:$0xff] %v96_v20 }

// kernel: cw_ner_forward.3
= control target key start
LH: loop header
LB: loop body
LE: loop exit
PB: predicated region body
PF: predicated region fallthrough
CT: control target
= control target key end

     0   :  { %s1060_s21 = smov 0   ;;  %s1062_s22 = smov 0   ;;  %s1176_s0 = inlined_call_operand.vmem [shape: f32[2,16,16], index: 0, kind: input, shape index: {}]   ;;  %s1177_s1 = inlined_call_operand.vmem [shape: f32[2,16,4,16], index: 1, kind: input, shape index: {}]   ;;  %s1178_s2 = inlined_call_operand.vmem [shape: f32[2,16,4], index: 2, kind: input, shape index: {}]   ;;  %s1179_s3 = inlined_call_operand.vmem [shape: f32[2,16,128], index: 3, kind: input, shape index: {}]   ;;  %s1180_s4 = inlined_call_operand.vmem [shape: f32[2,16,128], index: 4, kind: input, shape index: {}]   ;;  %s1181_s5 = inlined_call_operand.vmem [shape: f32[2,1,128], index: 5, kind: input, shape index: {}]   ;;  %s1182_s6 = inlined_call_operand.vmem [shape: f32[2,16,128], index: 6, kind: output, shape index: {}]  }
   0x1   :  { %s1064_s23 = smov 0  }
   0x2 LB: > { %s28_s24 = sadd.s32 1, %s1019_s22  ;;  %p944_p0 = scmp.ge.s32.totalorder %s1023_s23, 1  ;;  %s1023_s23 = sphi %s1064_s23, %s16_s23   ;;  %s1019_s22 = sphi %s1062_s22, %s1184_s22   ;;  %s1015_s21 = sphi %s1060_s21, %s1183_s21  }
   0x3   : > { %p30_p1 = scmp.ge.s32.totalorder %s28_s24, 2  ;;  %p295_p2 = scmp.lt.s32.totalorder %s1023_s23, 3 }
   0x5   : > { %s1186_s24 = smov (%p30_p1, %s28_s24), 0  ;;  %p296_p3 = pnand %p944_p0, %p295_p2 }
   0x6   : > { %p365_p4 = scmp.lt.s32.totalorder (!%p296_p3), %s1015_s21, 1 }
   0x7   : > { %299 = sbr.rel (%p296_p3) target bundleno = 327 (0x147), region = 44 }
   0xc   : > { %v420_v0 = vlaneseq  ;;  %s1188_s21 = smov (!%p365_p4, %s1015_s21), 1  ;;  %vm563_vm0 = vcmask 125952   ;;  %vm719_vm1 = vcmask 130048   ;;  %vm698_vm2 = vcmask 1041409  }
   0xd   : > { %s1081_s25 = sshll.u32 %s1188_s21, 4  ;;  %s964_s29 = sshll.u32 %s1188_s21, 6  ;;  %vm700_vm3 = vcmask 1042434   ;;  %vm702_vm4 = vcmask 1043459   ;;  %vm704_vm5 = vcmask 1044484   ;;  %vm706_vm6 = vcmask 1045509  }
   0xe   : > { %v421_v1 = vshrl.u32 %v420_v0, 7  ;;  %s392_s28 = scalar_lea.vmem %s1178_s2, %s1081_s25  ;;  %s1091_s8 = scalar_lea.vmem %s1177_s1, %s964_s29  ;;  %vm708_vm7 = vcmask 1046534   ;;  %vm710_vm8 = vcmask 1047559  }
   0xf   : > { %v418_v2 = vld [vmem:[%s392_s28 + $0x8] sm:$0xff]  ;;  %v417_v9 = vld [vmem:[%s392_s28] sm:$0xff]  ;;  %v543_v22 = vld [vmem:[%s1091_s8 + $0x30] sm:$0xf]  ;;  %s403_s11 = scalar_lea.vmem %s1180_s4, %s1081_s25  ;;  %s398_s14 = scalar_lea.vmem %s1179_s3, %s1081_s25 }
  0x10   : > { %999 = vset.pattern.permute.xlu2 %v421_v1  ;;  %998 = vset.pattern.permute.xlu1 %v421_v1  ;;  %v503_v3 = vperm.slane %v418_v2, 4  ;;  %v489_v4 = vperm.slane %v418_v2, 2  ;;  %v475_v5 = vperm.slane %v418_v2, 0  ;;  %v510_v6 = vperm.slane %v418_v2, 5  ;;  %v541_v23 = vld [vmem:[%s1091_s8 + $0x28] sm:$0xf]  ;;  %s1113_s17 = scalar_lea.vmem %s1176_s0, %s1081_s25  ;;  %s406_s20 = scalar_lea.vmem %s1181_s5, %s1188_s21 }
  0x11   : > { %997 = vset.pattern.permute.xlu0 %v421_v1  ;;  %v496_v7 = vperm.slane %v418_v2, 3  ;;  %v482_v8 = vperm.slane %v418_v2, 1  ;;  %v426_v10 = vperm.slane %v417_v9, 1  ;;  %v419_v11 = vperm.slane %v417_v9, 0  ;;  %v539_v24 = vld [vmem:[%s1091_s8 + $0x20] sm:$0xf]  ;;  %s415_s27 = scalar_lea.vmem %s1182_s6, %s1081_s25 }
  0x12   : > { %v517_v12 = vperm.slane %v418_v2, 6  ;;  %v440_v13 = vperm.slane %v417_v9, 3  ;;  %v433_v14 = vperm.slane %v417_v9, 2  ;;  %v524_v15 = vperm.slane %v418_v2, 7  ;;  %v544_v30 = vld [vmem:[%s1091_s8 + $0x34] sm:$0xf] }
  0x13   : > { %v461_v16 = vperm.slane %v417_v9, 6  ;;  %v454_v17 = vperm.slane %v417_v9, 5  ;;  %v447_v18 = vperm.slane %v417_v9, 4  ;;  %v468_v19 = vperm.slane %v417_v9, 7  ;;  %v542_v36 = vld [vmem:[%s1091_s8 + $0x2c] sm:$0xf] }
  0x14   : > { %v681_v37 = vld [vmem:[%s403_s11 + $0x8] sm:$0xff]  ;;  %v540_v40 = vld [vmem:[%s1091_s8 + $0x24] sm:$0xf]  ;;  %v531_v63 = vld [vmem:[%s1091_s8] sm:$0xf] }
  0x15   : > { %v679_v38 = vld [vmem:[%s398_s14 + $0x8] sm:$0xff]  ;;  %969 = vmatpush.msra.mxu2 %v681_v37  ;;  %v532_v42 = vld [vmem:[%s1091_s8 + $0x4] sm:$0xf]  ;;  %738 = vmatpush.msra.mxu0 %v681_v37 }
  0x16   : > { %971 = vmatpush.msra.mxu3 %v679_v38  ;;  %v680_v45 = vld [vmem:[%s403_s11] sm:$0xff]  ;;  %767 = vmatpush.msra.mxu1 %v679_v38  ;;  %v677_v50 = vld [vmem:[%s1113_s17 + $0x8] sm:$0xff] }
  0x17   : > { %v678_v46 = vld [vmem:[%s398_s14] sm:$0xff]  ;;  %970 = vmatpush.msra.mxu2 %v680_v45  ;;  %739 = vmatpush.msra.mxu0 %v680_v45 }
  0x18   : > { %508 = vperm.xlu2 %999, %v503_v3   ;;  %494 = vperm.xlu1 %998, %v489_v4   ;;  %v545_v3 = vld [vmem:[%s1091_s8 + $0x38] sm:$0xf] }
  0x19   : > { %480 = vperm.xlu0 %997, %v475_v5   ;;  %972 = vmatpush.msra.mxu3 %v678_v46 }
  0x1a   : > { %960 = vmatmul.msk.f32.vlgmr.msra.gmra.mxu3 %vm719_vm1, %v677_v50  ;;  %768 = vmatpush.msra.mxu1 %v678_v46 }
  0x20   : > { %515 = vperm.xlu2 %999, %v510_v6   ;;  %501 = vperm.xlu1 %998, %v496_v7   ;;  %v534_v6 = vld [vmem:[%s1091_s8 + $0xc] sm:$0xf] }
  0x21   : > { %487 = vperm.xlu0 %997, %v482_v8  }
  0x28   : > { %431 = vperm.xlu2 %999, %v426_v10   ;;  %424 = vperm.xlu1 %998, %v419_v11  }
  0x29   : > { %522 = vperm.xlu0 %997, %v517_v12  }
  0x30   : > { %445 = vperm.xlu2 %999, %v440_v13   ;;  %438 = vperm.xlu1 %998, %v433_v14  }
  0x31   : > { %529 = vperm.xlu0 %997, %v524_v15  }
  0x38   : > { %466 = vperm.xlu2 %999, %v461_v16   ;;  %459 = vperm.xlu1 %998, %v454_v17  }
  0x39   : > { %452 = vperm.xlu0 %997, %v447_v18  }
  0x41   : > { %473 = vperm.xlu0 %997, %v468_v19  }
  0x72   : > { %v509_v20 = vpop.permute.xlu2 %508 }
  0x73   : > { %v559_v26 = vmul.f32 %v543_v22, %v509_v20 }
  0x75   : > { %v648_v33 = vsel %vm563_vm0, %v559_v26, 0.0 }
  0x76   : > { %v649_v41 = vrot.slane %v648_v33, 4 }
  0x78   : > { %v650_v55 = vadd.f32 %v649_v41, %v648_v33  ;;  %v546_v33 = vld [vmem:[%s1091_s8 + $0x3c] sm:$0xf] }
  0x7a   : > { %v516_v21 = vpop.permute.xlu2 %515  ;;  %v651_v4 = vrot.slane %v650_v55, 2 }
  0x7b   : > { %v560_v39 = vmul.f32 %v544_v30, %v516_v21 }
  0x7c   : > { %v652_v19 = vadd.f32 %v651_v4, %v650_v55  ;;  %v535_v4 = vld [vmem:[%s1091_s8 + $0x10] sm:$0xf] }
  0x7d   : > { %v655_v52 = vsel %vm563_vm0, %v560_v39, 0.0 }
  0x7e   : > { %v656_v61 = vrot.slane %v655_v52, 4 }
  0x80   : > { %v657_v12 = vadd.f32 %v656_v61, %v655_v52 }
  0x82   : > { %v432_v31 = vpop.permute.xlu2 %431  ;;  %v658_v26 = vrot.slane %v657_v12, 2 }
  0x83   : > { %v548_v53 = vmul.f32 %v532_v42, %v432_v31 }
  0x84   : > { %v659_v45 = vadd.f32 %v658_v26, %v657_v12 }
  0x85   : > { %v571_v0 = vsel %vm563_vm0, %v548_v53, 0.0 }
  0x86   : > { %v572_v13 = vrot.slane %v571_v0, 4 }
  0x8a   : > { %v495_v25 = vpop.permute.xlu1 %494  ;;  %v446_v62 = vpop.permute.xlu2 %445 }
  0x8b   : > { %v557_v27 = vmul.f32 %v541_v23, %v495_v25  ;;  %v481_v28 = vpop.permute.xlu0 %480  ;;  %v550_v15 = vmul.f32 %v534_v6, %v446_v62  ;;  %v536_v62 = vld [vmem:[%s1091_s8 + $0x14] sm:$0xf] }
  0x8c   : > { %v555_v29 = vmul.f32 %v539_v24, %v481_v28  ;;  %v533_v28 = vld [vmem:[%s1091_s8 + $0x8] sm:$0xf] }
  0x8d   : > { %v634_v34 = vsel %vm563_vm0, %v557_v27, 0.0  ;;  %v573_v27 = vadd.f32 %v572_v13, %v571_v0 }
  0x8e   : > { %v620_v32 = vsel %vm563_vm0, %v555_v29, 0.0  ;;  %v635_v43 = vrot.slane %v634_v34, 4  ;;  %v585_v29 = vsel %vm563_vm0, %v550_v15, 0.0 }
  0x8f   : > { %v621_v35 = vrot.slane %v620_v32, 4  ;;  %v574_v46 = vrot.slane %v573_v27, 2 }
  0x90   : > { %v636_v56 = vadd.f32 %v635_v43, %v634_v34  ;;  %v653_v34 = vrot.slane %v652_v19, 1 }
  0x91   : > { %v622_v47 = vadd.f32 %v621_v35, %v620_v32 }
  0x92   : > { %v502_v44 = vpop.permute.xlu1 %501  ;;  %v637_v5 = vrot.slane %v636_v56, 2  ;;  %v467_v37 = vpop.permute.xlu2 %466 }
  0x93   : > { %v558_v48 = vmul.f32 %v542_v36, %v502_v44  ;;  %v488_v49 = vpop.permute.xlu0 %487  ;;  %v623_v59 = vrot.slane %v622_v47, 2  ;;  %v537_v36 = vld [vmem:[%s1091_s8 + $0x18] sm:$0xf]  ;;  %v676_v44 = vld [vmem:[%s1113_s17] sm:$0xff] }
  0x94   : > { %v556_v51 = vmul.f32 %v540_v40, %v488_v49  ;;  %v638_v20 = vadd.f32 %v637_v5, %v636_v56  ;;  %959 = vmatmul.msk.f32.vlgmr.msra.gmra.mxu1 %vm719_vm1, %v676_v44  ;;  %v575_v5 = vadd.f32 %v574_v46, %v573_v27 }
  0x95   : > { %v641_v54 = vsel %vm563_vm0, %v558_v48, 0.0  ;;  %v624_v8 = vadd.f32 %v623_v59, %v622_v47  ;;  %v586_v47 = vrot.slane %v585_v29, 4 }
  0x96   : > { %v642_v57 = vrot.slane %v641_v54, 4  ;;  %v627_v58 = vsel %vm563_vm0, %v556_v51, 0.0  ;;  %v639_v35 = vrot.slane %v638_v20, 1  ;;  %v553_v51 = vmul.f32 %v537_v36, %v467_v37 }
  0x97   : > { %v628_v60 = vrot.slane %v627_v58, 4  ;;  %v625_v22 = vrot.slane %v624_v8, 1  ;;  %v587_v0 = vadd.f32 %v586_v47, %v585_v29 }
  0x98   : > { %v643_v1 = vadd.f32 %v642_v57, %v641_v54  ;;  %v640_v53 = vadd.f32 %v639_v35, %v638_v20  ;;  %v654_v57 = vadd.f32 %v653_v34, %v652_v19  ;;  %v538_v34 = vld [vmem:[%s1091_s8 + $0x1c] sm:$0xf] }
  0x99   : > { %v629_v2 = vadd.f32 %v628_v60, %v627_v58  ;;  %v626_v39 = vadd.f32 %v625_v22, %v624_v8  ;;  %v660_v60 = vrot.slane %v659_v45, 1 }
  0x9a   : > { %v425_v7 = vpop.permute.xlu1 %424  ;;  %v644_v16 = vrot.slane %v643_v1, 2 }
  0x9b   : > { %v630_v9 = vrot.slane %v629_v2, 2  ;;  %v523_v10 = vpop.permute.xlu0 %522  ;;  %v547_v11 = vmul.f32 %v531_v63, %v425_v7 }
  0x9c   : > { %v561_v14 = vmul.f32 %v545_v3, %v523_v10  ;;  %v645_v30 = vadd.f32 %v644_v16, %v643_v1 }
  0x9d   : > { %v631_v17 = vadd.f32 %v630_v9, %v629_v2  ;;  %v564_v18 = vsel %vm563_vm0, %v547_v11, 0.0  ;;  %v606_v2 = vsel %vm563_vm0, %v553_v51, 0.0 }
  0x9e   : > { %v662_v21 = vsel %vm563_vm0, %v561_v14, 0.0  ;;  %v565_v25 = vrot.slane %v564_v18, 4  ;;  %v646_v49 = vrot.slane %v645_v30, 1  ;;  %v661_v14 = vadd.f32 %v660_v60, %v659_v45 }
  0x9f   : > { %v632_v23 = vrot.slane %v631_v17, 1  ;;  %v663_v24 = vrot.slane %v662_v21, 4  ;;  %v607_v15 = vrot.slane %v606_v2, 4 }
  0xa0   : > { %v566_v41 = vadd.f32 %v565_v25, %v564_v18  ;;  %v647_v1 = vadd.f32 %v646_v49, %v645_v30  ;;  %v588_v18 = vrot.slane %v587_v0, 2  ;;  %v576_v25 = vrot.slane %v575_v5, 1 }
  0xa1   : > { %v633_v31 = vadd.f32 %v632_v23, %v631_v17  ;;  %v664_v32 = vadd.f32 %v663_v24, %v662_v21  ;;  %v608_v29 = vadd.f32 %v607_v15, %v606_v2 }
  0xa2   : > { %v439_v38 = vpop.permute.xlu1 %438  ;;  %v567_v58 = vrot.slane %v566_v41, 2  ;;  %v577_v47 = vadd.f32 %v576_v25, %v575_v5 }
  0xa3   : > { %v665_v40 = vrot.slane %v664_v32, 2  ;;  %v530_v42 = vpop.permute.xlu0 %529  ;;  %v549_v43 = vmul.f32 %v533_v28, %v439_v38  ;;  %v712_v50 = vsel %vm698_vm2, %v633_v31, %v626_v39 }
  0xa4   : > { %v562_v48 = vmul.f32 %v546_v33, %v530_v42  ;;  %v713_v63 = vsel %vm700_vm3, %v640_v53, %v712_v50  ;;  %v568_v9 = vadd.f32 %v567_v58, %v566_v41 }
  0xa5   : > { %v578_v52 = vsel %vm563_vm0, %v549_v43, 0.0  ;;  %v666_v54 = vadd.f32 %v665_v40, %v664_v32  ;;  %v714_v13 = vsel %vm702_vm4, %v647_v1, %v713_v63  ;;  %v589_v32 = vadd.f32 %v588_v18, %v587_v0 }
  0xa6   : > { %v669_v55 = vsel %vm563_vm0, %v562_v48, 0.0  ;;  %v579_v56 = vrot.slane %v578_v52, 4  ;;  %v715_v24 = vsel %vm704_vm5, %v654_v57, %v714_v13  ;;  %v569_v26 = vrot.slane %v568_v9, 1 }
  0xa7   : > { %v670_v59 = vrot.slane %v669_v55, 4  ;;  %v667_v6 = vrot.slane %v666_v54, 1  ;;  %v716_v36 = vsel %vm706_vm6, %v661_v14, %v715_v24  ;;  %v609_v43 = vrot.slane %v608_v29, 2 }
  0xa8   : > { %v580_v61 = vadd.f32 %v579_v56, %v578_v52  ;;  %v570_v39 = vadd.f32 %v569_v26, %v568_v9  ;;  %v590_v48 = vrot.slane %v589_v32, 1  ;;  %v1000_v9 = vld [vmem:[%s406_s20] ss:$0 sm:$0xff] }
  0xa9   : > { %v671_v3 = vadd.f32 %v670_v59, %v669_v55  ;;  %v668_v21 = vadd.f32 %v667_v6, %v666_v54  ;;  %v610_v55 = vadd.f32 %v609_v43, %v608_v29 }
  0xaa   : > { %v581_v7 = vrot.slane %v580_v61, 2  ;;  %v460_v8 = vpop.permute.xlu1 %459  ;;  %v699_v51 = vsel %vm698_vm2, %v577_v47, %v570_v39  ;;  %v591_v57 = vadd.f32 %v590_v48, %v589_v32 }
  0xab   : > { %v672_v10 = vrot.slane %v671_v3, 2  ;;  %v453_v11 = vpop.permute.xlu0 %452  ;;  %v552_v12 = vmul.f32 %v536_v62, %v460_v8  ;;  %v717_v38 = vsel %vm708_vm7, %v668_v21, %v716_v36  ;;  %v611_v63 = vrot.slane %v610_v55, 1  ;;  %v773_v8 = vpop.f32.mrf.mxu3 }
  0xac   : > { %v582_v16 = vadd.f32 %v581_v7, %v580_v61  ;;  %v551_v17 = vmul.f32 %v535_v4, %v453_v11 }
  0xad   : > { %v673_v19 = vadd.f32 %v672_v10, %v671_v3  ;;  %v599_v20 = vsel %vm563_vm0, %v552_v12, 0.0  ;;  %v612_v4 = vadd.f32 %v611_v63, %v610_v55 }
  0xae   : > { %v592_v22 = vsel %vm563_vm0, %v551_v17, 0.0  ;;  %v600_v23 = vrot.slane %v599_v20, 4  ;;  %v583_v30 = vrot.slane %v582_v16, 1 }
  0xaf   : > { %v674_v27 = vrot.slane %v673_v19, 1  ;;  %v593_v28 = vrot.slane %v592_v22, 4 }
  0xb0   : > { %v601_v31 = vadd.f32 %v600_v23, %v599_v20  ;;  %v584_v44 = vadd.f32 %v583_v30, %v582_v16 }
  0xb1   : > { %v594_v33 = vadd.f32 %v593_v28, %v592_v22  ;;  %v675_v35 = vadd.f32 %v674_v27, %v673_v19 }
  0xb2   : > { %v602_v37 = vrot.slane %v601_v31, 2  ;;  %v701_v56 = vsel %vm700_vm3, %v584_v44, %v699_v51 }
  0xb3   : > { %v595_v40 = vrot.slane %v594_v33, 2  ;;  %v474_v41 = vpop.permute.xlu0 %473  ;;  %v718_v42 = vsel %vm710_vm8, %v675_v35, %v717_v38  ;;  %v703_v62 = vsel %vm702_vm4, %v591_v57, %v701_v56 }
  0xb4   : > { %v603_v45 = vadd.f32 %v602_v37, %v601_v31  ;;  %v554_v46 = vmul.f32 %v538_v34, %v474_v41  ;;  %958 = vmatmul.msk.f32.vlgmr.msra.gmra.mxu2 %vm719_vm1, %v718_v42 }
  0xb5   : > { %v596_v49 = vadd.f32 %v595_v40, %v594_v33 }
  0xb6   : > { %v613_v50 = vsel %vm563_vm0, %v554_v46, 0.0  ;;  %v604_v53 = vrot.slane %v603_v45, 1 }
  0xb7   : > { %v597_v52 = vrot.slane %v596_v49, 1  ;;  %v614_v54 = vrot.slane %v613_v50, 4 }
  0xb8   : > { %v605_v60 = vadd.f32 %v604_v53, %v603_v45 }
  0xb9   : > { %v598_v58 = vadd.f32 %v597_v52, %v596_v49  ;;  %v615_v59 = vadd.f32 %v614_v54, %v613_v50 }
  0xbb   : > { %v616_v61 = vrot.slane %v615_v59, 2  ;;  %v705_v0 = vsel %vm704_vm5, %v598_v58, %v703_v62 }
  0xbc   : > { %v707_v3 = vsel %vm706_vm6, %v605_v60, %v705_v0 }
  0xbd   : > { %v617_v1 = vadd.f32 %v616_v61, %v615_v59  ;;  %v709_v6 = vsel %vm708_vm7, %v612_v4, %v707_v3 }
  0xbf   : > { %v618_v2 = vrot.slane %v617_v1, 1 }
  0xc1   : > { %v619_v5 = vadd.f32 %v618_v2, %v617_v1 }
  0xc3   : > { %v711_v7 = vsel %vm710_vm8, %v619_v5, %v709_v6 }
  0xc4   : > { %957 = vmatmul.msk.f32.vlgmr.msra.gmra.mxu0 %vm719_vm1, %v711_v7 }
 0x111   : > { %v770_v13 = vpop.f32.mrf.mxu1 }
 0x137   : > { %v744_v10 = vpop.f32.mrf.mxu2 }
 0x138   : > { %v774_v11 = vadd.f32 %v773_v8, %v744_v10 }
 0x13a   : > { %v781_v12 = vadd.f32 %v1000_v9, %v774_v11 }
 0x13c   : > { %783 = vst [vmem:[%s415_s27 + $0x8] sm:$0xff] %v781_v12 }
 0x141   : > { %v741_v14 = vpop.f32.mrf.mxu0 }
 0x142   : > { %v771_v15 = vadd.f32 %v770_v13, %v741_v14 }
 0x144   : > { %v780_v16 = vadd.f32 %v1000_v9, %v771_v15 }
 0x146   : > { %782 = vst [vmem:[%s415_s27] sm:$0xff] %v780_v16 }
 0x147 PF: > { %s16_s23 = sadd.s32 1, %s1023_s23   ;;  %s1183_s21 = smov %s1019_s22 }
 0x148   : > { %p13_p5 = scmp.ge.s32.totalorder %s16_s23, 4   ;;  %s1184_s22 = smov %s1186_s24 }
 0x14a   :  { %15 = sbr.rel (!%p13_p5) target bundleno = 2 (0x2), region = 89 }

// kernel: cw_ner_forward.4
= control target key start
LH: loop header
LB: loop body
LE: loop exit
PB: predicated region body
PF: predicated region fallthrough
CT: control target
= control target key end

     0   :  { %s1051_s9 = smov 0   ;;  %s1053_s10 = smov 0   ;;  %s1168_s0 = inlined_call_operand.vmem [shape: f32[2,8,2,128], index: 0, kind: input, shape index: {}]   ;;  %s1169_s1 = inlined_call_operand.vmem [shape: f32[2,32,128], index: 1, kind: input, shape index: {}]   ;;  %s1170_s2 = inlined_call_operand.vmem [shape: f32[2,8,2,32], index: 2, kind: output, shape index: {}]  }
   0x1   :  { %s1055_s11 = smov 0  }
   0x2 LB: > { %s24_s12 = sadd.s32 1, %s1026_s10  ;;  %p874_p0 = scmp.ge.s32.totalorder %s1030_s11, 1  ;;  %s1030_s11 = sphi %s1055_s11, %s12_s11   ;;  %s1026_s10 = sphi %s1053_s10, %s1172_s10   ;;  %s1022_s9 = sphi %s1051_s9, %s1171_s9  }
   0x3   : > { %p26_p1 = scmp.ge.s32.totalorder %s24_s12, 2  ;;  %p143_p2 = scmp.lt.s32.totalorder %s1030_s11, 3 }
   0x5   : > { %s1174_s12 = smov (%p26_p1, %s24_s12), 0  ;;  %p144_p3 = pnand %p874_p0, %p143_p2 }
   0x6   : > { %p179_p4 = scmp.lt.s32.totalorder (!%p144_p3), %s1022_s9, 1  ;;  %s1033_s21 = smov (!%p144_p3), 64  }
   0x7   : > { %147 = sbr.rel (%p144_p3) target bundleno = 4649 (0x1229), region = 28  ;;  %s1034_s22 = smov (!%p144_p3), 32  }
   0x8   : > { %s1035_s26 = smov (!%p144_p3), 96  }
   0xc   : > { %vm207_vm0 = vcmask 254976   ;;  %v1032_v0 = vmov 0.0   ;;  %s1176_s9 = smov (!%p179_p4, %s1022_s9), 1  ;;  %vm217_vm1 = vcmask 261120  }
   0xd   : > { %208 = vst.msk [vmem:[#allocation2] sm:$0x3] %vm207_vm0, %v1032_v0  ;;  %s914_s13 = sshll.u32 %s1176_s9, 5  ;;  %s913_s17 = sshll.u32 %s1176_s9, 4 }
   0xe   : > { %209 = vst.msk [vmem:[#allocation3] sm:$0x3] %vm207_vm0, %v1032_v0  ;;  %s192_s16 = scalar_lea.vmem %s1169_s1, %s914_s13  ;;  %s1084_s20 = scalar_lea.vmem %s1168_s0, %s913_s17 }
   0xf   : > { %v213_v1 = vld [vmem:[%s192_s16 + $0x18] sm:$0xff]  ;;  %v212_v2 = vld [vmem:[%s192_s16 + $0x10] sm:$0xff]  ;;  %v211_v3 = vld [vmem:[%s192_s16 + $0x8] sm:$0xff]  ;;  %s1097_s25 = scalar_lea.vmem %s1170_s2, %s913_s17 }
  0x10   : > { %233 = vmatpush.msra.mxu0 %v213_v1  ;;  %305 = vmatpush.msra.mxu1 %v213_v1  ;;  %v210_v4 = vld [vmem:[%s192_s16] sm:$0xff] }
  0x11   : > { %373 = vmatpush.msra.mxu2 %v213_v1  ;;  %441 = vmatpush.msra.mxu3 %v213_v1  ;;  %v216_v6 = vld [vmem:[%s1084_s20] sm:$0x3]  ;;  %v883_v34 = vld [vmem:[%s1084_s20 + $0x2] sm:$0x3]  ;;  %v887_v60 = vld [vmem:[%s1084_s20 + $0x4] sm:$0x3] }
  0x12   : > { %234 = vmatpush.msra.mxu0 %v212_v2  ;;  %306 = vmatpush.msra.mxu1 %v212_v2 }
  0x13   : > { %374 = vmatpush.msra.mxu2 %v212_v2  ;;  %442 = vmatpush.msra.mxu3 %v212_v2 }
  0x14   : > { %235 = vmatpush.msra.mxu0 %v211_v3  ;;  %v214_v5 = vld [vmem:[#allocation2] sm:$0x3]  ;;  %307 = vmatpush.msra.mxu1 %v211_v3 }
  0x15   : > { %375 = vmatpush.msra.mxu2 %v211_v3  ;;  %443 = vmatpush.msra.mxu3 %v211_v3  ;;  %v215_v10 = vld [vmem:[#allocation3] sm:$0x3] }
  0x16   : > { %236 = vmatpush.msra.mxu0 %v210_v4  ;;  %308 = vmatpush.msra.mxu1 %v210_v4 }
  0x17   : > { %881 = vmatmul.msk.f32.vlgmr.msra.gmra.mxu0 %vm217_vm1, %v214_v5  ;;  %376 = vmatpush.msra.mxu2 %v210_v4 }
  0x18   : > { %444 = vmatpush.msra.mxu3 %v210_v4  ;;  %509 = vmatpush.msrb.mxu0 %v213_v1 }
  0x19   : > { %577 = vmatpush.msrb.mxu1 %v213_v1  ;;  %645 = vmatpush.msrb.mxu2 %v213_v1 }
  0x1a   : > { %510 = vmatpush.msrb.mxu0 %v212_v2  ;;  %713 = vmatpush.msrb.mxu3 %v213_v1 }
  0x1b   : > { %578 = vmatpush.msrb.mxu1 %v212_v2  ;;  %646 = vmatpush.msrb.mxu2 %v212_v2 }
  0x1c   : > { %511 = vmatpush.msrb.mxu0 %v211_v3  ;;  %714 = vmatpush.msrb.mxu3 %v212_v2 }
  0x1d   : > { %579 = vmatpush.msrb.mxu1 %v211_v3  ;;  %647 = vmatpush.msrb.mxu2 %v211_v3 }
  0x1e   : > { %512 = vmatpush.msrb.mxu0 %v210_v4  ;;  %715 = vmatpush.msrb.mxu3 %v211_v3 }
  0x1f   : > { %580 = vmatpush.msrb.mxu1 %v210_v4  ;;  %648 = vmatpush.msrb.mxu2 %v210_v4 }
  0x20   : > { %716 = vmatpush.msrb.mxu3 %v210_v4 }
  0x94   : > { %v238_v7 = vpop.f32.mrf.mxu0 }
  0x95   : > { %v241_v8 = vadd.f32 %v238_v7, %v216_v6 }
  0x97   : > { %944 = vtanh.f32 %v241_v8  ;;  %v882_v11 = vmul.f32 -1.442695, %v241_v8 }
  0x99   : > { %946 = vpow2.f32 %v882_v11 }
  0x9d   : > { %v945_v9 = vpop.eup %944 }
  0x9e   : > { %268 = vrot.lane.b32.xlu0 %v945_v9, %s1033_s21 }
  0x9f   : > { %v947_v12 = vpop.eup %946 }
  0xa0   : > { %v245_v13 = vadd.f32 1.0, %v947_v12 }
  0xa2   : > { %948 = vrcp.f32 %v245_v13  ;;  %v257_v19 = vand.u32 2147483648, %v245_v13  ;;  %vm251_vm3 = vweird.f32 %v245_v13  ;;  %v255_v20 = vand.u32 2147483647, %v245_v13 }
  0xa4   : > { %v258_v22 = vor.u32 1.1754944e-38, %v257_v19  ;;  %vm256_vm5 = vcmp.eq.f32.partialorder %v255_v20, 8.507059e+37 }
  0xa6   : > { %263 = vrot.lane.b32.xlu0 %v215_v10, %s1034_s22 }
  0xa8   : > { %v949_v14 = vpop.eup %948 }
  0xa9   : > { %v247_v15 = vmul.f32 %v949_v14, %v245_v13  ;;  %vm252_vm2 = vweird.f32 %v949_v14 }
  0xaa   : > { %vm253_vm4 = vmor %vm251_vm3, %vm252_vm2 }
  0xab   : > { %v248_v16 = vsub.f32 1.0, %v247_v15 }
  0xad   : > { %v249_v17 = vmul.f32 %v949_v14, %v248_v16 }
  0xaf   : > { %v250_v18 = vadd.f32 %v949_v14, %v249_v17 }
  0xb1   : > { %v254_v21 = vsel %vm253_vm4, %v949_v14, %v250_v18 }
  0xb2   : > { %v259_v24 = vsel %vm256_vm5, %v258_v22, %v254_v21  ;;  %v891_v22 = vld [vmem:[%s1084_s20 + $0x6] sm:$0x3] }
 0x110   : > { %v269_v23 = vpop.permute.xlu0 %268 }
 0x111   : > { %v271_v25 = vmul.f32 %v269_v23, %v259_v24 }
 0x113   : > { %273 = vrot.lane.b32.xlu1 %v271_v25, %s1034_s22 }
 0x118   : > { %v264_v26 = vpop.permute.xlu0 %263 }
 0x119   : > { %v266_v27 = vmul.f32 %v264_v26, %v259_v24 }
 0x185   : > { %v274_v28 = vpop.permute.xlu1 %273 }
 0x186   : > { %v276_v29 = vadd.f32 %v274_v28, %v266_v27 }
 0x188   : > { %950 = vtanh.f32 %v276_v29 }
 0x18e   : > { %v951_v30 = vpop.eup %950 }
 0x18f   : > { %279 = vrot.lane.b32.xlu1 %v951_v30, %s1033_s21 }
 0x201   : > { %v280_v31 = vpop.permute.xlu1 %279 }
 0x202   : > { %v282_v32 = vmul.f32 %v280_v31, %v259_v24 }
 0x204   : > { %284 = vrot.lane.b32.xlu2 %v282_v32, %s1034_s22 }
 0x25e   : > { %v285_v33 = vpop.permute.xlu2 %284 }
 0x25f   : > { %288 = vst.msk [vmem:[%s1097_s25] sm:$0x3] %vm207_vm0, %v285_v33  ;;  %884 = vmatmul.msk.f32.vlgmr.msra.gmra.mxu1 %vm217_vm1, %v285_v33 }
 0x2dc   : > { %v310_v35 = vpop.f32.mrf.mxu1 }
 0x2dd   : > { %v313_v36 = vadd.f32 %v883_v34, %v310_v35 }
 0x2df   : > { %952 = vtanh.f32 %v313_v36  ;;  %v885_v38 = vmul.f32 -1.442695, %v313_v36 }
 0x2e1   : > { %954 = vpow2.f32 %v885_v38 }
 0x2e5   : > { %v953_v37 = vpop.eup %952 }
 0x2e6   : > { %336 = vrot.lane.b32.xlu2 %v953_v37, %s1033_s21 }
 0x2e7   : > { %v955_v39 = vpop.eup %954 }
 0x2e8   : > { %v317_v40 = vadd.f32 1.0, %v955_v39 }
 0x2ea   : > { %956 = vrcp.f32 %v317_v40  ;;  %v329_v46 = vand.u32 2147483648, %v317_v40  ;;  %vm323_vm7 = vweird.f32 %v317_v40  ;;  %v327_v47 = vand.u32 2147483647, %v317_v40 }
 0x2ec   : > { %v330_v49 = vor.u32 1.1754944e-38, %v329_v46  ;;  %vm328_vm9 = vcmp.eq.f32.partialorder %v327_v47, 8.507059e+37 }
 0x2f0   : > { %v957_v41 = vpop.eup %956 }
 0x2f1   : > { %v319_v42 = vmul.f32 %v957_v41, %v317_v40  ;;  %vm324_vm6 = vweird.f32 %v957_v41 }
 0x2f2   : > { %vm325_vm8 = vmor %vm323_vm7, %vm324_vm6 }
 0x2f3   : > { %v320_v43 = vsub.f32 1.0, %v319_v42 }
 0x2f5   : > { %v321_v44 = vmul.f32 %v957_v41, %v320_v43 }
 0x2f7   : > { %v322_v45 = vadd.f32 %v957_v41, %v321_v44 }
 0x2f9   : > { %v326_v48 = vsel %vm325_vm8, %v957_v41, %v322_v45 }
 0x2fa   : > { %v331_v51 = vsel %vm328_vm9, %v330_v49, %v326_v48  ;;  %v895_v48 = vld [vmem:[%s1084_s20 + $0x8] sm:$0x3] }
 0x2fb   : > { %v334_v53 = vmul.f32 %v331_v51, %v276_v29 }
 0x340   : > { %v337_v50 = vpop.permute.xlu2 %336 }
 0x341   : > { %v339_v52 = vmul.f32 %v337_v50, %v331_v51 }
 0x343   : > { %341 = vrot.lane.b32.xlu0 %v339_v52, %s1034_s22 }
 0x3b5   : > { %v342_v54 = vpop.permute.xlu0 %341 }
 0x3b6   : > { %v344_v55 = vadd.f32 %v342_v54, %v334_v53 }
 0x3b8   : > { %958 = vtanh.f32 %v344_v55 }
 0x3be   : > { %v959_v56 = vpop.eup %958 }
 0x3bf   : > { %347 = vrot.lane.b32.xlu1 %v959_v56, %s1033_s21 }
 0x431   : > { %v348_v57 = vpop.permute.xlu1 %347 }
 0x432   : > { %v350_v58 = vmul.f32 %v348_v57, %v331_v51 }
 0x434   : > { %352 = vrot.lane.b32.xlu2 %v350_v58, %s1034_s22 }
 0x48e   : > { %v353_v59 = vpop.permute.xlu2 %352 }
 0x48f   : > { %886 = vst.msk [vmem:[%s1097_s25 + $0x2] sm:$0x3] %vm207_vm0, %v353_v59  ;;  %888 = vmatmul.msk.f32.vlgmr.msra.gmra.mxu2 %vm217_vm1, %v353_v59 }
 0x512   : > { %v378_v61 = vpop.f32.mrf.mxu2 }
 0x513   : > { %v381_v62 = vadd.f32 %v887_v60, %v378_v61 }
 0x515   : > { %960 = vtanh.f32 %v381_v62  ;;  %v889_v0 = vmul.f32 -1.442695, %v381_v62 }
 0x517   : > { %962 = vpow2.f32 %v889_v0 }
 0x51b   : > { %v961_v63 = vpop.eup %960 }
 0x51c   : > { %404 = vrot.lane.b32.xlu0 %v961_v63, %s1033_s21 }
 0x51d   : > { %v963_v1 = vpop.eup %962 }
 0x51e   : > { %v385_v2 = vadd.f32 1.0, %v963_v1 }
 0x520   : > { %964 = vrcp.f32 %v385_v2  ;;  %v397_v8 = vand.u32 2147483648, %v385_v2  ;;  %vm391_vm11 = vweird.f32 %v385_v2  ;;  %v395_v9 = vand.u32 2147483647, %v385_v2 }
 0x522   : > { %v398_v11 = vor.u32 1.1754944e-38, %v397_v8  ;;  %vm396_vm13 = vcmp.eq.f32.partialorder %v395_v9, 8.507059e+37 }
 0x526   : > { %v965_v3 = vpop.eup %964 }
 0x527   : > { %v387_v4 = vmul.f32 %v965_v3, %v385_v2  ;;  %vm392_vm10 = vweird.f32 %v965_v3 }
 0x528   : > { %vm393_vm12 = vmor %vm391_vm11, %vm392_vm10 }
 0x529   : > { %v388_v5 = vsub.f32 1.0, %v387_v4 }
 0x52b   : > { %v389_v6 = vmul.f32 %v965_v3, %v388_v5 }
 0x52d   : > { %v390_v7 = vadd.f32 %v965_v3, %v389_v6 }
 0x52f   : > { %v394_v10 = vsel %vm393_vm12, %v965_v3, %v390_v7 }
 0x530   : > { %v399_v13 = vsel %vm396_vm13, %v398_v11, %v394_v10  ;;  %v899_v10 = vld [vmem:[%s1084_s20 + $0xa] sm:$0x3] }
 0x531   : > { %v402_v15 = vmul.f32 %v399_v13, %v344_v55 }
 0x58e   : > { %v405_v12 = vpop.permute.xlu0 %404 }
 0x58f   : > { %v407_v14 = vmul.f32 %v405_v12, %v399_v13 }
 0x591   : > { %409 = vrot.lane.b32.xlu1 %v407_v14, %s1034_s22 }
 0x603   : > { %v410_v16 = vpop.permute.xlu1 %409 }
 0x604   : > { %v412_v17 = vadd.f32 %v410_v16, %v402_v15 }
 0x606   : > { %966 = vtanh.f32 %v412_v17 }
 0x60c   : > { %v967_v18 = vpop.eup %966 }
 0x60d   : > { %415 = vrot.lane.b32.xlu2 %v967_v18, %s1033_s21 }
 0x667   : > { %v416_v19 = vpop.permute.xlu2 %415 }
 0x668   : > { %v418_v20 = vmul.f32 %v416_v19, %v399_v13 }
 0x66a   : > { %420 = vrot.lane.b32.xlu0 %v418_v20, %s1034_s22 }
 0x6dc   : > { %v421_v21 = vpop.permute.xlu0 %420 }
 0x6dd   : > { %890 = vst.msk [vmem:[%s1097_s25 + $0x4] sm:$0x3] %vm207_vm0, %v421_v21  ;;  %892 = vmatmul.msk.f32.vlgmr.msra.gmra.mxu3 %vm217_vm1, %v421_v21 }
 0x760   : > { %v446_v23 = vpop.f32.mrf.mxu3 }
 0x761   : > { %v449_v24 = vadd.f32 %v891_v22, %v446_v23 }
 0x763   : > { %968 = vtanh.f32 %v449_v24  ;;  %v893_v26 = vmul.f32 -1.442695, %v449_v24 }
 0x765   : > { %970 = vpow2.f32 %v893_v26 }
 0x769   : > { %v969_v25 = vpop.eup %968 }
 0x76a   : > { %472 = vrot.lane.b32.xlu1 %v969_v25, %s1033_s21 }
 0x76b   : > { %v971_v27 = vpop.eup %970 }
 0x76c   : > { %v453_v28 = vadd.f32 1.0, %v971_v27 }
 0x76e   : > { %972 = vrcp.f32 %v453_v28  ;;  %v465_v34 = vand.u32 2147483648, %v453_v28  ;;  %vm459_vm15 = vweird.f32 %v453_v28  ;;  %v463_v35 = vand.u32 2147483647, %v453_v28 }
 0x770   : > { %v466_v37 = vor.u32 1.1754944e-38, %v465_v34  ;;  %vm464_vm3 = vcmp.eq.f32.partialorder %v463_v35, 8.507059e+37 }
 0x774   : > { %v973_v29 = vpop.eup %972 }
 0x775   : > { %v455_v30 = vmul.f32 %v973_v29, %v453_v28  ;;  %vm460_vm14 = vweird.f32 %v973_v29 }
 0x776   : > { %vm461_vm2 = vmor %vm459_vm15, %vm460_vm14 }
 0x777   : > { %v456_v31 = vsub.f32 1.0, %v455_v30 }
 0x779   : > { %v457_v32 = vmul.f32 %v973_v29, %v456_v31 }
 0x77b   : > { %v458_v33 = vadd.f32 %v973_v29, %v457_v32 }
 0x77d   : > { %v462_v36 = vsel %vm461_vm2, %v973_v29, %v458_v33 }
 0x77e   : > { %v467_v39 = vsel %vm464_vm3, %v466_v37, %v462_v36  ;;  %v903_v36 = vld [vmem:[%s1084_s20 + $0xc] sm:$0x3] }
 0x77f   : > { %v470_v41 = vmul.f32 %v467_v39, %v412_v17 }
 0x7dc   : > { %v473_v38 = vpop.permute.xlu1 %472 }
 0x7dd   : > { %v475_v40 = vmul.f32 %v473_v38, %v467_v39 }
 0x7df   : > { %477 = vrot.lane.b32.xlu2 %v475_v40, %s1034_s22 }
 0x839   : > { %v478_v42 = vpop.permute.xlu2 %477 }
 0x83a   : > { %v480_v43 = vadd.f32 %v478_v42, %v470_v41 }
 0x83c   : > { %974 = vtanh.f32 %v480_v43 }
 0x842   : > { %v975_v44 = vpop.eup %974 }
 0x843   : > { %483 = vrot.lane.b32.xlu0 %v975_v44, %s1033_s21 }
 0x8b5   : > { %v484_v45 = vpop.permute.xlu0 %483 }
 0x8b6   : > { %v486_v46 = vmul.f32 %v484_v45, %v467_v39 }
 0x8b8   : > { %488 = vrot.lane.b32.xlu1 %v486_v46, %s1034_s22 }
 0x92a   : > { %v489_v47 = vpop.permute.xlu1 %488 }
 0x92b   : > { %894 = vst.msk [vmem:[%s1097_s25 + $0x6] sm:$0x3] %vm207_vm0, %v489_v47  ;;  %896 = vmatmul.msk.f32.vlgmr.msrb.gmra.mxu0 %vm217_vm1, %v489_v47 }
 0x9a8   : > { %v514_v49 = vpop.f32.mrf.mxu0 }
 0x9a9   : > { %v517_v50 = vadd.f32 %v895_v48, %v514_v49 }
 0x9ab   : > { %976 = vtanh.f32 %v517_v50  ;;  %v897_v52 = vmul.f32 -1.442695, %v517_v50 }
 0x9ad   : > { %978 = vpow2.f32 %v897_v52 }
 0x9b1   : > { %v977_v51 = vpop.eup %976 }
 0x9b2   : > { %540 = vrot.lane.b32.xlu2 %v977_v51, %s1033_s21 }
 0x9b3   : > { %v979_v53 = vpop.eup %978 }
 0x9b4   : > { %v521_v54 = vadd.f32 1.0, %v979_v53 }
 0x9b6   : > { %980 = vrcp.f32 %v521_v54  ;;  %v533_v60 = vand.u32 2147483648, %v521_v54  ;;  %vm527_vm5 = vweird.f32 %v521_v54  ;;  %v531_v61 = vand.u32 2147483647, %v521_v54 }
 0x9b8   : > { %v534_v63 = vor.u32 1.1754944e-38, %v533_v60  ;;  %vm532_vm7 = vcmp.eq.f32.partialorder %v531_v61, 8.507059e+37 }
 0x9bc   : > { %v981_v55 = vpop.eup %980 }
 0x9bd   : > { %v523_v56 = vmul.f32 %v981_v55, %v521_v54  ;;  %vm528_vm4 = vweird.f32 %v981_v55 }
 0x9be   : > { %vm529_vm6 = vmor %vm527_vm5, %vm528_vm4 }
 0x9bf   : > { %v524_v57 = vsub.f32 1.0, %v523_v56 }
 0x9c1   : > { %v525_v58 = vmul.f32 %v981_v55, %v524_v57 }
 0x9c3   : > { %v526_v59 = vadd.f32 %v981_v55, %v525_v58 }
 0x9c5   : > { %v530_v62 = vsel %vm529_vm6, %v981_v55, %v526_v59 }
 0x9c6   : > { %v535_v1 = vsel %vm532_vm7, %v534_v63, %v530_v62  ;;  %v907_v62 = vld [vmem:[%s1084_s20 + $0xe] sm:$0x3] }
 0x9c7   : > { %v538_v3 = vmul.f32 %v535_v1, %v480_v43 }
 0xa0c   : > { %v541_v0 = vpop.permute.xlu2 %540 }
 0xa0d   : > { %v543_v2 = vmul.f32 %v541_v0, %v535_v1 }
 0xa0f   : > { %545 = vrot.lane.b32.xlu0 %v543_v2, %s1034_s22 }
 0xa81   : > { %v546_v4 = vpop.permute.xlu0 %545 }
 0xa82   : > { %v548_v5 = vadd.f32 %v546_v4, %v538_v3 }
 0xa84   : > { %982 = vtanh.f32 %v548_v5 }
 0xa8a   : > { %v983_v6 = vpop.eup %982 }
 0xa8b   : > { %551 = vrot.lane.b32.xlu1 %v983_v6, %s1033_s21 }
 0xafd   : > { %v552_v7 = vpop.permute.xlu1 %551 }
 0xafe   : > { %v554_v8 = vmul.f32 %v552_v7, %v535_v1 }
 0xb00   : > { %556 = vrot.lane.b32.xlu2 %v554_v8, %s1034_s22 }
 0xb5a   : > { %v557_v9 = vpop.permute.xlu2 %556 }
 0xb5b   : > { %898 = vst.msk [vmem:[%s1097_s25 + $0x8] sm:$0x3] %vm207_vm0, %v557_v9  ;;  %900 = vmatmul.msk.f32.vlgmr.msrb.gmra.mxu1 %vm217_vm1, %v557_v9 }
 0xbd8   : > { %v582_v11 = vpop.f32.mrf.mxu1 }
 0xbd9   : > { %v585_v12 = vadd.f32 %v899_v10, %v582_v11 }
 0xbdb   : > { %984 = vtanh.f32 %v585_v12  ;;  %v901_v14 = vmul.f32 -1.442695, %v585_v12 }
 0xbdd   : > { %986 = vpow2.f32 %v901_v14 }
 0xbe1   : > { %v985_v13 = vpop.eup %984 }
 0xbe2   : > { %608 = vrot.lane.b32.xlu0 %v985_v13, %s1033_s21 }
 0xbe3   : > { %v987_v15 = vpop.eup %986 }
 0xbe4   : > { %v589_v16 = vadd.f32 1.0, %v987_v15 }
 0xbe6   : > { %988 = vrcp.f32 %v589_v16  ;;  %v601_v22 = vand.u32 2147483648, %v589_v16  ;;  %vm595_vm9 = vweird.f32 %v589_v16  ;;  %v599_v23 = vand.u32 2147483647, %v589_v16 }
 0xbe8   : > { %v602_v25 = vor.u32 1.1754944e-38, %v601_v22  ;;  %vm600_vm11 = vcmp.eq.f32.partialorder %v599_v23, 8.507059e+37 }
 0xbec   : > { %v989_v17 = vpop.eup %988 }
 0xbed   : > { %v591_v18 = vmul.f32 %v989_v17, %v589_v16  ;;  %vm596_vm8 = vweird.f32 %v989_v17 }
 0xbee   : > { %vm597_vm10 = vmor %vm595_vm9, %vm596_vm8 }
 0xbef   : > { %v592_v19 = vsub.f32 1.0, %v591_v18 }
 0xbf1   : > { %v593_v20 = vmul.f32 %v989_v17, %v592_v19 }
 0xbf3   : > { %v594_v21 = vadd.f32 %v989_v17, %v593_v20 }
 0xbf5   : > { %v598_v24 = vsel %vm597_vm10, %v989_v17, %v594_v21 }
 0xbf6   : > { %v603_v27 = vsel %vm600_vm11, %v602_v25, %v598_v24 }
 0xbf7   : > { %v606_v29 = vmul.f32 %v603_v27, %v548_v5 }
 0xc54   : > { %v609_v26 = vpop.permute.xlu0 %608 }
 0xc55   : > { %v611_v28 = vmul.f32 %v609_v26, %v603_v27 }
 0xc57   : > { %613 = vrot.lane.b32.xlu1 %v611_v28, %s1034_s22 }
 0xcc9   : > { %v614_v30 = vpop.permute.xlu1 %613 }
 0xcca   : > { %v616_v31 = vadd.f32 %v614_v30, %v606_v29 }
 0xccc   : > { %990 = vtanh.f32 %v616_v31 }
 0xcd2   : > { %v991_v32 = vpop.eup %990 }
 0xcd3   : > { %619 = vrot.lane.b32.xlu2 %v991_v32, %s1033_s21 }
 0xd2d   : > { %v620_v33 = vpop.permute.xlu2 %619 }
 0xd2e   : > { %v622_v34 = vmul.f32 %v620_v33, %v603_v27 }
 0xd30   : > { %624 = vrot.lane.b32.xlu0 %v622_v34, %s1034_s22 }
 0xda2   : > { %v625_v35 = vpop.permute.xlu0 %624 }
 0xda3   : > { %902 = vst.msk [vmem:[%s1097_s25 + $0xa] sm:$0x3] %vm207_vm0, %v625_v35  ;;  %904 = vmatmul.msk.f32.vlgmr.msrb.gmra.mxu2 %vm217_vm1, %v625_v35 }
 0xe26   : > { %v650_v37 = vpop.f32.mrf.mxu2 }
 0xe27   : > { %v653_v38 = vadd.f32 %v903_v36, %v650_v37 }
 0xe29   : > { %992 = vtanh.f32 %v653_v38  ;;  %v905_v40 = vmul.f32 -1.442695, %v653_v38 }
 0xe2b   : > { %994 = vpow2.f32 %v905_v40 }
 0xe2f   : > { %v993_v39 = vpop.eup %992 }
 0xe30   : > { %676 = vrot.lane.b32.xlu1 %v993_v39, %s1033_s21 }
 0xe31   : > { %v995_v41 = vpop.eup %994 }
 0xe32   : > { %v657_v42 = vadd.f32 1.0, %v995_v41 }
 0xe34   : > { %996 = vrcp.f32 %v657_v42  ;;  %v669_v48 = vand.u32 2147483648, %v657_v42  ;;  %vm663_vm13 = vweird.f32 %v657_v42  ;;  %v667_v49 = vand.u32 2147483647, %v657_v42 }
 0xe36   : > { %v670_v51 = vor.u32 1.1754944e-38, %v669_v48  ;;  %vm668_vm15 = vcmp.eq.f32.partialorder %v667_v49, 8.507059e+37 }
 0xe3a   : > { %v997_v43 = vpop.eup %996 }
 0xe3b   : > { %v659_v44 = vmul.f32 %v997_v43, %v657_v42  ;;  %vm664_vm12 = vweird.f32 %v997_v43 }
 0xe3c   : > { %vm665_vm14 = vmor %vm663_vm13, %vm664_vm12 }
 0xe3d   : > { %v660_v45 = vsub.f32 1.0, %v659_v44 }
 0xe3f   : > { %v661_v46 = vmul.f32 %v997_v43, %v660_v45 }
 0xe41   : > { %v662_v47 = vadd.f32 %v997_v43, %v661_v46 }
 0xe43   : > { %v666_v50 = vsel %vm665_vm14, %v997_v43, %v662_v47 }
 0xe44   : > { %v671_v53 = vsel %vm668_vm15, %v670_v51, %v666_v50 }
 0xe45   : > { %v674_v55 = vmul.f32 %v671_v53, %v616_v31 }
 0xea2   : > { %v677_v52 = vpop.permute.xlu1 %676 }
 0xea3   : > { %v679_v54 = vmul.f32 %v677_v52, %v671_v53 }
 0xea5   : > { %681 = vrot.lane.b32.xlu2 %v679_v54, %s1034_s22 }
 0xeff   : > { %v682_v56 = vpop.permute.xlu2 %681 }
 0xf00   : > { %v684_v57 = vadd.f32 %v682_v56, %v674_v55 }
 0xf02   : > { %998 = vtanh.f32 %v684_v57 }
 0xf08   : > { %v999_v58 = vpop.eup %998 }
 0xf09   : > { %687 = vrot.lane.b32.xlu0 %v999_v58, %s1033_s21 }
 0xf7b   : > { %v688_v59 = vpop.permute.xlu0 %687 }
 0xf7c   : > { %v690_v60 = vmul.f32 %v688_v59, %v671_v53 }
 0xf7e   : > { %692 = vrot.lane.b32.xlu1 %v690_v60, %s1034_s22 }
 0xff0   : > { %v693_v61 = vpop.permute.xlu1 %692 }
 0xff1   : > { %906 = vst.msk [vmem:[%s1097_s25 + $0xc] sm:$0x3] %vm207_vm0, %v693_v61  ;;  %908 = vmatmul.msk.f32.vlgmr.msrb.gmra.mxu3 %vm217_vm1, %v693_v61 }
0x1074   : > { %v718_v63 = vpop.f32.mrf.mxu3 }
0x1075   : > { %v721_v0 = vadd.f32 %v907_v62, %v718_v63 }
0x1077   : > { %1000 = vtanh.f32 %v721_v0  ;;  %v909_v2 = vmul.f32 -1.442695, %v721_v0 }
0x1079   : > { %1002 = vpow2.f32 %v909_v2 }
0x107d   : > { %v1001_v1 = vpop.eup %1000 }
0x107e   : > { %744 = vrot.lane.b32.xlu2 %v1001_v1, %s1033_s21 }
0x107f   : > { %v1003_v3 = vpop.eup %1002 }
0x1080   : > { %v725_v4 = vadd.f32 1.0, %v1003_v3 }
0x1082   : > { %1004 = vrcp.f32 %v725_v4  ;;  %v737_v10 = vand.u32 2147483648, %v725_v4  ;;  %vm731_vm1 = vweird.f32 %v725_v4  ;;  %v735_v11 = vand.u32 2147483647, %v725_v4 }
0x1084   : > { %v738_v13 = vor.u32 1.1754944e-38, %v737_v10  ;;  %vm736_vm4 = vcmp.eq.f32.partialorder %v735_v11, 8.507059e+37 }
0x1088   : > { %v1005_v5 = vpop.eup %1004 }
0x1089   : > { %v727_v6 = vmul.f32 %v1005_v5, %v725_v4  ;;  %vm732_vm2 = vweird.f32 %v1005_v5 }
0x108a   : > { %vm733_vm3 = vmor %vm731_vm1, %vm732_vm2 }
0x108b   : > { %v728_v7 = vsub.f32 1.0, %v727_v6 }
0x108d   : > { %v729_v8 = vmul.f32 %v1005_v5, %v728_v7 }
0x108f   : > { %v730_v9 = vadd.f32 %v1005_v5, %v729_v8 }
0x1091   : > { %v734_v12 = vsel %vm733_vm3, %v1005_v5, %v730_v9 }
0x1092   : > { %v739_v15 = vsel %vm736_vm4, %v738_v13, %v734_v12 }
0x1093   : > { %v742_v17 = vmul.f32 %v739_v15, %v684_v57 }
0x10d8   : > { %v745_v14 = vpop.permute.xlu2 %744 }
0x10d9   : > { %v747_v16 = vmul.f32 %v745_v14, %v739_v15 }
0x10db   : > { %749 = vrot.lane.b32.xlu0 %v747_v16, %s1034_s22 }
0x114d   : > { %v750_v18 = vpop.permute.xlu0 %749 }
0x114e   : > { %v752_v19 = vadd.f32 %v750_v18, %v742_v17 }
0x1150   : > { %1006 = vtanh.f32 %v752_v19  ;;  %767 = vrot.lane.b32.xlu0 %v752_v19, %s1035_s26 }
0x1156   : > { %v1007_v20 = vpop.eup %1006 }
0x1157   : > { %755 = vrot.lane.b32.xlu1 %v1007_v20, %s1033_s21 }
0x11c2   : > { %v768_v21 = vpop.permute.xlu0 %767 }
0x11c3   : > { %770 = vst.msk [vmem:[#allocation3] sm:$0x3] %vm207_vm0, %v768_v21 }
0x11c9   : > { %v756_v22 = vpop.permute.xlu1 %755 }
0x11ca   : > { %v758_v23 = vmul.f32 %v756_v22, %v739_v15 }
0x11cc   : > { %760 = vrot.lane.b32.xlu2 %v758_v23, %s1034_s22 }
0x1226   : > { %v761_v24 = vpop.permute.xlu2 %760 }
0x1227   : > { %910 = vst.msk [vmem:[%s1097_s25 + $0xe] sm:$0x3] %vm207_vm0, %v761_v24 }
0x1228   : > { %765 = vst.msk [vmem:[#allocation2] sm:$0x3] %vm207_vm0, %v761_v24 }
0x1229 PF: > { %s12_s11 = sadd.s32 1, %s1030_s11   ;;  %s1171_s9 = smov %s1026_s10 }
0x122a   : > { %p9_p5 = scmp.ge.s32.totalorder %s12_s11, 4   ;;  %s1172_s10 = smov %s1174_s12 }
0x122c   :  { %11 = sbr.rel (!%p9_p5) target bundleno = 2 (0x2), region = 79 }

</bundles_post_ra>
